<compile_context>
chip_gen: v7x
topology: tpu7x:2x2x1
jax: 0.10.0
libtpu: 0.0.40
codegen_flags: <defaults>
</compile_context>

<pallas_src>
import numpy as np
import jax
import jax.numpy as jnp
from jax.experimental import pallas as pl
from jax.experimental.pallas import tpu as pltpu


# ------------------------------ Pallas kernel --------------------------------
def _make_up_kernel(C1, C2, Cin, Cout, H1, W1, H2u, W2u, Wp, Lp, Lin,
                    pad_top, pad_left):
    """Build the kernel body with all static layout constants closed over."""

    def kernel(x1_ref, x2f_ref, ah_ref, aw_ref, w1_ref, b1_ref,
               w2_ref, b2_ref, mask_ref, out_ref, cat_s, p2_s):
        # x1_ref  : (1, C1, H1, W1)   coarse features (to be 2x upsampled)
        # x2f_ref : (1, C2, Lp)       skip features, conv-padded + flattened (host layout)
        # ah_ref  : (H2u, H1)         row interpolation matrix (align_corners=True)
        # aw_ref  : (W2u, W1)         col interpolation matrix
        # w1_ref  : (9, Cout, Cin)    conv1 taps on concat([x2, up(x1)])  (BN folded)
        # b1_ref  : (Cout, 1)
        # w2_ref  : (9, Cout, Cout)   conv2 taps (BN folded);  b2_ref : (Cout, 1)
        # mask_ref: (1, Lin)          1.0 at real pixels, 0.0 at vertical pad columns
        # out_ref : (1, Cout, Lin)    conv2 output over the active padded-flat window
        # cat_s   : (Cin, Lp)  VMEM   padded-flat concat([x2, up(x1)])
        # p2_s    : (Cout, Lp) VMEM   padded-flat conv1 activations (conv2 input)
        x1 = x1_ref[0]                                                 # (C1, H1, W1)

        # --- separable bilinear upsample (align_corners=True): W axis, then H axis ---
        aw_b = jnp.broadcast_to(aw_ref[...], (C1, W2u, W1))
        tw = jnp.einsum('chw,cWw->chW', x1, aw_b,
                        preferred_element_type=jnp.float32)            # (C1, H1, W2u)
        ah_b = jnp.broadcast_to(ah_ref[...], (C1, H2u, H1))
        up = jnp.einsum('cYh,chW->cYW', ah_b, tw,
                        preferred_element_type=jnp.float32)            # (C1, H2u, W2u)

        # --- build concat([x2, up(x1)]) in the padded-flat layout ---
        # x2 channels first (already zero-padded + flattened on the host),
        # then the upsampled x1 channels scattered into a zeroed region
        # (covers both the F.pad placement and the conv's own zero ring).
        cat_s[0:C2, :] = x2f_ref[0]
        cat_s[C2:Cin, :] = jnp.zeros((C1, Lp), jnp.float32)
        for i in range(H2u):
            base = (1 + pad_top + i) * Wp + (1 + pad_left)
            cat_s[C2:Cin, base:base + W2u] = up[:, i, :]

        # --- conv1 (3x3, pad=1, BN folded) over the concat + ReLU ---
        acc1 = jnp.zeros((Cout, Lin), jnp.float32)
        for dy in range(3):
            for dx in range(3):
                t = dy * 3 + dx
                off = dy * Wp + dx
                acc1 = acc1 + jnp.dot(w1_ref[t], cat_s[:, off:off + Lin],
                                      preferred_element_type=jnp.float32)
        r1 = jnp.maximum(acc1 + b1_ref[...], 0.0) * mask_ref[...]      # zero pad-column junk

        # --- conv2 input: only the borders need zeroing; the interior is fully
        #     overwritten by the (already masked) conv1 activations ---
        p2_s[:, 0:Wp + 1] = jnp.zeros((Cout, Wp + 1), jnp.float32)
        p2_s[:, Wp + 1 + Lin:Lp] = jnp.zeros((Cout, Lp - (Wp + 1) - Lin), jnp.float32)
        p2_s[:, Wp + 1:Wp + 1 + Lin] = r1

        # --- conv2 (3x3, pad=1, BN folded) + ReLU ---
        acc2 = jnp.zeros((Cout, Lin), jnp.float32)
        for dy in range(3):
            for dx in range(3):
                t = dy * 3 + dx
                off = dy * Wp + dx
                acc2 = acc2 + jnp.dot(w2_ref[t], p2_s[:, off:off + Lin],
                                      preferred_element_type=jnp.float32)
        out_ref[0] = jnp.maximum(acc2 + b2_ref[...], 0.0)

    return kernel


# ------------------------------ host wrapper ----------------------------------
@jax.jit
def up_forward(x1, x2, w1f, b1f, w2f, b2f):
    """Up.forward (bilinear=True): upsample x1, pad, concat with x2, DoubleConv."""
    N, C1, H1, W1 = x1.shape
    N2, C2, H2, W2 = x2.shape
    Cout, Cin = w1f.shape[0], w1f.shape[1]
    assert N == N2 and Cin == C1 + C2
    H2u, W2u = 2 * H1, 2 * W1                      # Upsample(scale_factor=2) output size
    diffY, diffX = H2 - H2u, W2 - W2u
    assert diffY >= 0 and diffX >= 0
    pad_top, pad_left = diffY // 2, diffX // 2

    Hp, Wp = H2 + 2, W2 + 2                        # conv zero-padding ring
    Lp = Hp * Wp                                   # padded-flat plane length
    Lin = (H2 - 1) * Wp + W2                       # active window: flat positions [Wp+1, Wp+1+Lin)

    # ---- host-side layout plumbing (no compute) ----
    ah = jnp.asarray(_bilinear_matrix_align_corners(H2u, H1))
    aw = jnp.asarray(_bilinear_matrix_align_corners(W2u, W1))
    x2f = jnp.pad(x2, ((0, 0), (0, 0), (1, 1), (1, 1))).reshape(N, C2, Lp)
    w1t = jnp.transpose(w1f, (2, 3, 0, 1)).reshape(9, Cout, Cin)   # channel order = [x2 ; x1]
    w2t = jnp.transpose(w2f, (2, 3, 0, 1)).reshape(9, Cout, Cout)
    cols = (np.arange(Lin) + (Wp + 1)) % Wp
    mask = jnp.asarray(((cols >= 1) & (cols <= W2)).astype(np.float32))[None, :]

    kernel = _make_up_kernel(C1, C2, Cin, Cout, H1, W1, H2u, W2u, Wp, Lp, Lin,
                             pad_top, pad_left)
    out_flat = pl.pallas_call(
        kernel,
        out_shape=jax.ShapeDtypeStruct((N, Cout, Lin), jnp.float32),
        grid=(N,),
        in_specs=[
            pl.BlockSpec((1, C1, H1, W1), lambda n: (n, 0, 0, 0)),
            pl.BlockSpec((1, C2, Lp),     lambda n: (n, 0, 0)),
            pl.BlockSpec((H2u, H1),       lambda n: (0, 0)),
            pl.BlockSpec((W2u, W1),       lambda n: (0, 0)),
            pl.BlockSpec((9, Cout, Cin),  lambda n: (0, 0, 0)),
            pl.BlockSpec((Cout, 1),       lambda n: (0, 0)),
            pl.BlockSpec((9, Cout, Cout), lambda n: (0, 0, 0)),
            pl.BlockSpec((Cout, 1),       lambda n: (0, 0)),
            pl.BlockSpec((1, Lin),        lambda n: (0, 0)),
        ],
        out_specs=pl.BlockSpec((1, Cout, Lin), lambda n: (n, 0, 0)),
        scratch_shapes=[pltpu.VMEM((Cin, Lp), jnp.float32),
                        pltpu.VMEM((Cout, Lp), jnp.float32)],
        compiler_params=pltpu.CompilerParams(dimension_semantics=("parallel",)),
    )(x1, x2f, ah, aw, w1t, b1f.reshape(Cout, 1), w2t, b2f.reshape(Cout, 1), mask)

    # ---- un-flatten the padded-flat window back to NCHW (layout only) ----
    full = jnp.pad(out_flat, ((0, 0), (0, 0), (Wp + 1, Lp - (Wp + 1) - Lin)))
    return full.reshape(N, Cout, Hp, Wp)[:, :, 1:1 + H2, 1:1 + W2]


# ---------------------------- parameter helpers --------------------------------
def _bilinear_matrix_align_corners(out_size, in_size):
    """1-D interpolation matrix of nn.Upsample(mode='bilinear', align_corners=True)."""
    A = np.zeros((out_size, in_size), dtype=np.float32)
    if in_size == 1 or out_size == 1:
        A[:, 0] = 1.0
        return A
    scale = (in_size - 1) / (out_size - 1)
    for i in range(out_size):
        src = i * scale
        p0 = min(int(np.floor(src)), in_size - 1)
        p1 = min(p0 + 1, in_size - 1)
        lam = src - p0
        A[i, p0] += 1.0 - lam
        A[i, p1] += lam
    return A


def fold_bn_into_conv(w, b, gamma, beta, mean, var, eps=1e-5):
    """Fold an inference-mode BatchNorm2d into the preceding Conv2d."""
    scale = gamma / jnp.sqrt(var + eps)
    return w * scale[:, None, None, None], (b - mean) * scale + beta


if __name__ == "__main__":
    # Small shapes consistent with the module: x1 is the coarse map (2x upsampled),
    # x2 the finer skip connection; DoubleConv(in_channels=C1+C2, out_channels=Cout).
    N, C1, C2, Cout = 2, 4, 4, 4
    H1 = W1 = 8
    H2 = W2 = 16
    Cin = C1 + C2

    key = jax.random.PRNGKey(0)
    ks = jax.random.split(key, 10)

    x1 = jax.random.normal(ks[0], (N, C1, H1, W1), jnp.float32)
    x2 = jax.random.normal(ks[1], (N, C2, H2, W2), jnp.float32)

    # DoubleConv parameters (deterministic).
    w1 = 0.2 * jax.random.normal(ks[2], (Cout, Cin, 3, 3), jnp.float32)
    b1 = 0.1 * jax.random.normal(ks[3], (Cout,), jnp.float32)
    w2 = 0.2 * jax.random.normal(ks[4], (Cout, Cout, 3, 3), jnp.float32)
    b2 = 0.1 * jax.random.normal(ks[5], (Cout,), jnp.float32)

    # BatchNorm params; running stats at nn.BatchNorm2d init (mean=0, var=1).
    g1 = 1.0 + 0.1 * jax.random.normal(ks[6], (Cout,), jnp.float32)
    be1 = 0.05 * jax.random.normal(ks[7], (Cout,), jnp.float32)
    g2 = 1.0 + 0.1 * jax.random.normal(ks[8], (Cout,), jnp.float32)
    be2 = 0.05 * jax.random.normal(ks[9], (Cout,), jnp.float32)
    mean = jnp.zeros((Cout,), jnp.float32)
    var = jnp.ones((Cout,), jnp.float32)

    w1f, b1f = fold_bn_into_conv(w1, b1, g1, be1, mean, var)
    w2f, b2f = fold_bn_into_conv(w2, b2, g2, be2, mean, var)

    out = jax.block_until_ready(up_forward(x1, x2, w1f, b1f, w2f, b2f))

    # -------------------- pure-JAX reference of the same math --------------------
    hp = jax.lax.Precision.HIGHEST
    ah = jnp.asarray(_bilinear_matrix_align_corners(2 * H1, H1))
    aw = jnp.asarray(_bilinear_matrix_align_corners(2 * W1, W1))
    x1u = jnp.einsum('Yh,nchw,Ww->ncYW', ah, x1, aw, precision=hp)
    dY, dX = H2 - 2 * H1, W2 - 2 * W1
    x1u = jnp.pad(x1u, ((0, 0), (0, 0), (dY // 2, dY - dY // 2), (dX // 2, dX - dX // 2)))
    xcat = jnp.concatenate([x2, x1u], axis=1)
    dn = ('NCHW', 'OIHW', 'NCHW')
    r = jax.lax.conv_general_dilated(xcat, w1f, (1, 1), 'SAME',
                                     dimension_numbers=dn, precision=hp)
    r = jnp.maximum(r + b1f[None, :, None, None], 0.0)
    r = jax.lax.conv_general_dilated(r, w2f, (1, 1), 'SAME',
                                     dimension_numbers=dn, precision=hp)
    ref = jnp.maximum(r + b2f[None, :, None, None], 0.0)

    if not np.allclose(np.asarray(out), np.asarray(ref), rtol=5e-3, atol=5e-3):
        err = float(np.max(np.abs(np.asarray(out) - np.asarray(ref))))
        raise AssertionError(f"Pallas kernel output does not match reference (max err {err})")

    print("KERNEL_OK")
</pallas_src>

<mosaic_0001>
module attributes {stable_mosaic.version = 11 : i64} {
  func.func @kernel(%arg0: i32, %arg1: memref<1x4x8x8xf32, #tpu.memory_space<vmem>>, %arg2: memref<1x4x324xf32, #tpu.memory_space<vmem>>, %arg3: memref<16x8xf32, #tpu.memory_space<vmem>>, %arg4: memref<16x8xf32, #tpu.memory_space<vmem>>, %arg5: memref<9x4x8xf32, #tpu.memory_space<vmem>>, %arg6: memref<4x1xf32, #tpu.memory_space<vmem>>, %arg7: memref<9x4x4xf32, #tpu.memory_space<vmem>>, %arg8: memref<4x1xf32, #tpu.memory_space<vmem>>, %arg9: memref<1x286xf32, #tpu.memory_space<vmem>>, %arg10: memref<1x4x286xf32, #tpu.memory_space<vmem>>, %arg11: memref<8x324xf32, #tpu.memory_space<vmem>>, %arg12: memref<4x324xf32, #tpu.memory_space<vmem>>) attributes {dimension_semantics = [#tpu.dimension_semantics<parallel>], iteration_bounds = array<i64: 2>, scalar_prefetch = 0 : i64, scratch_operands = 2 : i64, tpu.core_type = #tpu.core_type<tc>, window_params = [{transform_indices = @transform_0, window_bounds = array<i64: 1, 4, 8, 8>}, {transform_indices = @transform_1, window_bounds = array<i64: 1, 4, 324>}, {pipeline_mode = #tpu.pipeline_mode<synchronous>, transform_indices = @transform_2, window_bounds = array<i64: 16, 8>}, {pipeline_mode = #tpu.pipeline_mode<synchronous>, transform_indices = @transform_3, window_bounds = array<i64: 16, 8>}, {pipeline_mode = #tpu.pipeline_mode<synchronous>, transform_indices = @transform_4, window_bounds = array<i64: 9, 4, 8>}, {pipeline_mode = #tpu.pipeline_mode<synchronous>, transform_indices = @transform_5, window_bounds = array<i64: 4, 1>}, {pipeline_mode = #tpu.pipeline_mode<synchronous>, transform_indices = @transform_6, window_bounds = array<i64: 9, 4, 4>}, {pipeline_mode = #tpu.pipeline_mode<synchronous>, transform_indices = @transform_7, window_bounds = array<i64: 4, 1>}, {pipeline_mode = #tpu.pipeline_mode<synchronous>, transform_indices = @transform_8, window_bounds = array<i64: 1, 286>}, {transform_indices = @transform_9, window_bounds = array<i64: 1, 4, 286>}]} {
    %c0 = arith.constant 0 : index
    %c0_0 = arith.constant 0 : index
    %c0_1 = arith.constant 0 : index
    %c0_2 = arith.constant 0 : index
    %0 = vector.load %arg1[%c0, %c0_0, %c0_1, %c0_2] : memref<1x4x8x8xf32, #tpu.memory_space<vmem>>, vector<1x4x8x8xf32>
    %1 = vector.shape_cast %0 : vector<1x4x8x8xf32> to vector<4x8x8xf32>
    %c0_3 = arith.constant 0 : index
    %c0_4 = arith.constant 0 : index
    %2 = vector.load %arg4[%c0_3, %c0_4] : memref<16x8xf32, #tpu.memory_space<vmem>>, vector<16x8xf32>
    %3 = vector.shape_cast %2 : vector<16x8xf32> to vector<1x16x8xf32>
    %4 = vector.broadcast %3 : vector<1x16x8xf32> to vector<4x16x8xf32>
    "tpu.trace_start"() <{level = 10 : i32, message = "chw,cWw->chW"}> : () -> ()
    %cst = arith.constant dense<0.000000e+00> : vector<4x8x16xf32>
    %5 = tpu.matmul %1, %4, %cst {dimension_numbers = #tpu.dot_dimension_numbers<[2], [2], [1], [1], [0, 0, 0, 1, 1, 1], [0], [0]>} : vector<4x8x8xf32>, vector<4x16x8xf32>, vector<4x8x16xf32> -> vector<4x8x16xf32>
    "tpu.trace_stop"() : () -> ()
    %c0_5 = arith.constant 0 : index
    %c0_6 = arith.constant 0 : index
    %6 = vector.load %arg3[%c0_5, %c0_6] : memref<16x8xf32, #tpu.memory_space<vmem>>, vector<16x8xf32>
    %7 = vector.shape_cast %6 : vector<16x8xf32> to vector<1x16x8xf32>
    %8 = vector.broadcast %7 : vector<1x16x8xf32> to vector<4x16x8xf32>
    "tpu.trace_start"() <{level = 10 : i32, message = "cYh,chW->cYW"}> : () -> ()
    %cst_7 = arith.constant dense<0.000000e+00> : vector<4x16x16xf32>
    %9 = tpu.matmul %8, %5, %cst_7 {dimension_numbers = #tpu.dot_dimension_numbers<[2], [1], [1], [2], [0, 0, 0, 1, 1, 2], [0], [0]>} : vector<4x16x8xf32>, vector<4x8x16xf32>, vector<4x16x16xf32> -> vector<4x16x16xf32>
    "tpu.trace_stop"() : () -> ()
    %c0_8 = arith.constant 0 : index
    %c0_9 = arith.constant 0 : index
    %c0_10 = arith.constant 0 : index
    %10 = vector.load %arg2[%c0_8, %c0_9, %c0_10] : memref<1x4x324xf32, #tpu.memory_space<vmem>>, vector<1x4x324xf32>
    %11 = vector.shape_cast %10 : vector<1x4x324xf32> to vector<4x324xf32>
    %c0_11 = arith.constant 0 : index
    %c0_12 = arith.constant 0 : index
    %12 = vector.load %arg11[%c0_11, %c0_12] : memref<8x324xf32, #tpu.memory_space<vmem>>, vector<4x324xf32>
    tpu.vector_store %arg11[%c0_11, %c0_12], %11 {strides = array<i32>} : memref<8x324xf32, #tpu.memory_space<vmem>>, vector<4x324xf32>,
    %cst_13 = arith.constant 0.000000e+00 : f32
    %13 = vector.broadcast %cst_13 : f32 to vector<4x324xf32>
    %c4 = arith.constant 4 : index
    %c0_14 = arith.constant 0 : index
    %14 = vector.load %arg11[%c4, %c0_14] : memref<8x324xf32, #tpu.memory_space<vmem>>, vector<4x324xf32>
    tpu.vector_store %arg11[%c4, %c0_14], %13 {strides = array<i32>} : memref<8x324xf32, #tpu.memory_space<vmem>>, vector<4x324xf32>,
    %15 = vector.extract_strided_slice %9 {offsets = [0, 0, 0], sizes = [4, 1, 16], strides = [1, 1, 1]} : vector<4x16x16xf32> to vector<4x1x16xf32>
    %16 = vector.shape_cast %15 : vector<4x1x16xf32> to vector<4x16xf32>
    %c4_15 = arith.constant 4 : index
    %c19 = arith.constant 19 : index
    %17 = vector.load %arg11[%c4_15, %c19] : memref<8x324xf32, #tpu.memory_space<vmem>>, vector<4x16xf32>
    tpu.vector_store %arg11[%c4_15, %c19], %16 {strides = array<i32>} : memref<8x324xf32, #tpu.memory_space<vmem>>, vector<4x16xf32>,
    %18 = vector.extract_strided_slice %9 {offsets = [0, 1, 0], sizes = [4, 1, 16], strides = [1, 1, 1]} : vector<4x16x16xf32> to vector<4x1x16xf32>
    %19 = vector.shape_cast %18 : vector<4x1x16xf32> to vector<4x16xf32>
    %c4_16 = arith.constant 4 : index
    %c37 = arith.constant 37 : index
    %20 = vector.load %arg11[%c4_16, %c37] : memref<8x324xf32, #tpu.memory_space<vmem>>, vector<4x16xf32>
    tpu.vector_store %arg11[%c4_16, %c37], %19 {strides = array<i32>} : memref<8x324xf32, #tpu.memory_space<vmem>>, vector<4x16xf32>,
    %21 = vector.extract_strided_slice %9 {offsets = [0, 2, 0], sizes = [4, 1, 16], strides = [1, 1, 1]} : vector<4x16x16xf32> to vector<4x1x16xf32>
    %22 = vector.shape_cast %21 : vector<4x1x16xf32> to vector<4x16xf32>
    %c4_17 = arith.constant 4 : index
    %c55 = arith.constant 55 : index
    %23 = vector.load %arg11[%c4_17, %c55] : memref<8x324xf32, #tpu.memory_space<vmem>>, vector<4x16xf32>
    tpu.vector_store %arg11[%c4_17, %c55], %22 {strides = array<i32>} : memref<8x324xf32, #tpu.memory_space<vmem>>, vector<4x16xf32>,
    %24 = vector.extract_strided_slice %9 {offsets = [0, 3, 0], sizes = [4, 1, 16], strides = [1, 1, 1]} : vector<4x16x16xf32> to vector<4x1x16xf32>
    %25 = vector.shape_cast %24 : vector<4x1x16xf32> to vector<4x16xf32>
    %c4_18 = arith.constant 4 : index
    %c73 = arith.constant 73 : index
    %26 = vector.load %arg11[%c4_18, %c73] : memref<8x324xf32, #tpu.memory_space<vmem>>, vector<4x16xf32>
    tpu.vector_store %arg11[%c4_18, %c73], %25 {strides = array<i32>} : memref<8x324xf32, #tpu.memory_space<vmem>>, vector<4x16xf32>,
    %27 = vector.extract_strided_slice %9 {offsets = [0, 4, 0], sizes = [4, 1, 16], strides = [1, 1, 1]} : vector<4x16x16xf32> to vector<4x1x16xf32>
    %28 = vector.shape_cast %27 : vector<4x1x16xf32> to vector<4x16xf32>
    %c4_19 = arith.constant 4 : index
    %c91 = arith.constant 91 : index
    %29 = vector.load %arg11[%c4_19, %c91] : memref<8x324xf32, #tpu.memory_space<vmem>>, vector<4x16xf32>
    tpu.vector_store %arg11[%c4_19, %c91], %28 {strides = array<i32>} : memref<8x324xf32, #tpu.memory_space<vmem>>, vector<4x16xf32>,
    %30 = vector.extract_strided_slice %9 {offsets = [0, 5, 0], sizes = [4, 1, 16], strides = [1, 1, 1]} : vector<4x16x16xf32> to vector<4x1x16xf32>
    %31 = vector.shape_cast %30 : vector<4x1x16xf32> to vector<4x16xf32>
    %c4_20 = arith.constant 4 : index
    %c109 = arith.constant 109 : index
    %32 = vector.load %arg11[%c4_20, %c109] : memref<8x324xf32, #tpu.memory_space<vmem>>, vector<4x16xf32>
    tpu.vector_store %arg11[%c4_20, %c109], %31 {strides = array<i32>} : memref<8x324xf32, #tpu.memory_space<vmem>>, vector<4x16xf32>,
    %33 = vector.extract_strided_slice %9 {offsets = [0, 6, 0], sizes = [4, 1, 16], strides = [1, 1, 1]} : vector<4x16x16xf32> to vector<4x1x16xf32>
    %34 = vector.shape_cast %33 : vector<4x1x16xf32> to vector<4x16xf32>
    %c4_21 = arith.constant 4 : index
    %c127 = arith.constant 127 : index
    %35 = vector.load %arg11[%c4_21, %c127] : memref<8x324xf32, #tpu.memory_space<vmem>>, vector<4x16xf32>
    tpu.vector_store %arg11[%c4_21, %c127], %34 {strides = array<i32>} : memref<8x324xf32, #tpu.memory_space<vmem>>, vector<4x16xf32>,
    %36 = vector.extract_strided_slice %9 {offsets = [0, 7, 0], sizes = [4, 1, 16], strides = [1, 1, 1]} : vector<4x16x16xf32> to vector<4x1x16xf32>
    %37 = vector.shape_cast %36 : vector<4x1x16xf32> to vector<4x16xf32>
    %c4_22 = arith.constant 4 : index
    %c145 = arith.constant 145 : index
    %38 = vector.load %arg11[%c4_22, %c145] : memref<8x324xf32, #tpu.memory_space<vmem>>, vector<4x16xf32>
    tpu.vector_store %arg11[%c4_22, %c145], %37 {strides = array<i32>} : memref<8x324xf32, #tpu.memory_space<vmem>>, vector<4x16xf32>,
    %39 = vector.extract_strided_slice %9 {offsets = [0, 8, 0], sizes = [4, 1, 16], strides = [1, 1, 1]} : vector<4x16x16xf32> to vector<4x1x16xf32>
    %40 = vector.shape_cast %39 : vector<4x1x16xf32> to vector<4x16xf32>
    %c4_23 = arith.constant 4 : index
    %c163 = arith.constant 163 : index
    %41 = vector.load %arg11[%c4_23, %c163] : memref<8x324xf32, #tpu.memory_space<vmem>>, vector<4x16xf32>
    tpu.vector_store %arg11[%c4_23, %c163], %40 {strides = array<i32>} : memref<8x324xf32, #tpu.memory_space<vmem>>, vector<4x16xf32>,
    %42 = vector.extract_strided_slice %9 {offsets = [0, 9, 0], sizes = [4, 1, 16], strides = [1, 1, 1]} : vector<4x16x16xf32> to vector<4x1x16xf32>
    %43 = vector.shape_cast %42 : vector<4x1x16xf32> to vector<4x16xf32>
    %c4_24 = arith.constant 4 : index
    %c181 = arith.constant 181 : index
    %44 = vector.load %arg11[%c4_24, %c181] : memref<8x324xf32, #tpu.memory_space<vmem>>, vector<4x16xf32>
    tpu.vector_store %arg11[%c4_24, %c181], %43 {strides = array<i32>} : memref<8x324xf32, #tpu.memory_space<vmem>>, vector<4x16xf32>,
    %45 = vector.extract_strided_slice %9 {offsets = [0, 10, 0], sizes = [4, 1, 16], strides = [1, 1, 1]} : vector<4x16x16xf32> to vector<4x1x16xf32>
    %46 = vector.shape_cast %45 : vector<4x1x16xf32> to vector<4x16xf32>
    %c4_25 = arith.constant 4 : index
    %c199 = arith.constant 199 : index
    %47 = vector.load %arg11[%c4_25, %c199] : memref<8x324xf32, #tpu.memory_space<vmem>>, vector<4x16xf32>
    tpu.vector_store %arg11[%c4_25, %c199], %46 {strides = array<i32>} : memref<8x324xf32, #tpu.memory_space<vmem>>, vector<4x16xf32>,
    %48 = vector.extract_strided_slice %9 {offsets = [0, 11, 0], sizes = [4, 1, 16], strides = [1, 1, 1]} : vector<4x16x16xf32> to vector<4x1x16xf32>
    %49 = vector.shape_cast %48 : vector<4x1x16xf32> to vector<4x16xf32>
    %c4_26 = arith.constant 4 : index
    %c217 = arith.constant 217 : index
    %50 = vector.load %arg11[%c4_26, %c217] : memref<8x324xf32, #tpu.memory_space<vmem>>, vector<4x16xf32>
    tpu.vector_store %arg11[%c4_26, %c217], %49 {strides = array<i32>} : memref<8x324xf32, #tpu.memory_space<vmem>>, vector<4x16xf32>,
    %51 = vector.extract_strided_slice %9 {offsets = [0, 12, 0], sizes = [4, 1, 16], strides = [1, 1, 1]} : vector<4x16x16xf32> to vector<4x1x16xf32>
    %52 = vector.shape_cast %51 : vector<4x1x16xf32> to vector<4x16xf32>
    %c4_27 = arith.constant 4 : index
    %c235 = arith.constant 235 : index
    %53 = vector.load %arg11[%c4_27, %c235] : memref<8x324xf32, #tpu.memory_space<vmem>>, vector<4x16xf32>
    tpu.vector_store %arg11[%c4_27, %c235], %52 {strides = array<i32>} : memref<8x324xf32, #tpu.memory_space<vmem>>, vector<4x16xf32>,
    %54 = vector.extract_strided_slice %9 {offsets = [0, 13, 0], sizes = [4, 1, 16], strides = [1, 1, 1]} : vector<4x16x16xf32> to vector<4x1x16xf32>
    %55 = vector.shape_cast %54 : vector<4x1x16xf32> to vector<4x16xf32>
    %c4_28 = arith.constant 4 : index
    %c253 = arith.constant 253 : index
    %56 = vector.load %arg11[%c4_28, %c253] : memref<8x324xf32, #tpu.memory_space<vmem>>, vector<4x16xf32>
    tpu.vector_store %arg11[%c4_28, %c253], %55 {strides = array<i32>} : memref<8x324xf32, #tpu.memory_space<vmem>>, vector<4x16xf32>,
    %57 = vector.extract_strided_slice %9 {offsets = [0, 14, 0], sizes = [4, 1, 16], strides = [1, 1, 1]} : vector<4x16x16xf32> to vector<4x1x16xf32>
    %58 = vector.shape_cast %57 : vector<4x1x16xf32> to vector<4x16xf32>
    %c4_29 = arith.constant 4 : index
    %c271 = arith.constant 271 : index
    %59 = vector.load %arg11[%c4_29, %c271] : memref<8x324xf32, #tpu.memory_space<vmem>>, vector<4x16xf32>
    tpu.vector_store %arg11[%c4_29, %c271], %58 {strides = array<i32>} : memref<8x324xf32, #tpu.memory_space<vmem>>, vector<4x16xf32>,
    %60 = vector.extract_strided_slice %9 {offsets = [0, 15, 0], sizes = [4, 1, 16], strides = [1, 1, 1]} : vector<4x16x16xf32> to vector<4x1x16xf32>
    %61 = vector.shape_cast %60 : vector<4x1x16xf32> to vector<4x16xf32>
    %c4_30 = arith.constant 4 : index
    %c289 = arith.constant 289 : index
    %62 = vector.load %arg11[%c4_30, %c289] : memref<8x324xf32, #tpu.memory_space<vmem>>, vector<4x16xf32>
    tpu.vector_store %arg11[%c4_30, %c289], %61 {strides = array<i32>} : memref<8x324xf32, #tpu.memory_space<vmem>>, vector<4x16xf32>,
    %cst_31 = arith.constant 0.000000e+00 : f32
    %63 = vector.broadcast %cst_31 : f32 to vector<4x286xf32>
    %c0_32 = arith.constant 0 : index
    %c0_33 = arith.constant 0 : index
    %c0_34 = arith.constant 0 : index
    %64 = vector.load %arg5[%c0_32, %c0_33, %c0_34] : memref<9x4x8xf32, #tpu.memory_space<vmem>>, vector<1x4x8xf32>
    %65 = vector.shape_cast %64 : vector<1x4x8xf32> to vector<4x8xf32>
    %c0_35 = arith.constant 0 : index
    %c0_36 = arith.constant 0 : index
    %66 = vector.load %arg11[%c0_35, %c0_36] : memref<8x324xf32, #tpu.memory_space<vmem>>, vector<8x286xf32>
    %cst_37 = arith.constant dense<0.000000e+00> : vector<4x286xf32>
    %67 = tpu.matmul %65, %66, %cst_37 {dimension_numbers = #tpu.dot_dimension_numbers<[1], [0], [0], [1], [0, 0, 1, 1], [], []>} : vector<4x8xf32>, vector<8x286xf32>, vector<4x286xf32> -> vector<4x286xf32>
    %68 = arith.addf %63, %67 : vector<4x286xf32>
    %c1 = arith.constant 1 : index
    %c0_38 = arith.constant 0 : index
    %c0_39 = arith.constant 0 : index
    %69 = vector.load %arg5[%c1, %c0_38, %c0_39] : memref<9x4x8xf32, #tpu.memory_space<vmem>>, vector<1x4x8xf32>
    %70 = vector.shape_cast %69 : vector<1x4x8xf32> to vector<4x8xf32>
    %c0_40 = arith.constant 0 : index
    %c1_41 = arith.constant 1 : index
    %71 = vector.load %arg11[%c0_40, %c1_41] : memref<8x324xf32, #tpu.memory_space<vmem>>, vector<8x286xf32>
    %cst_42 = arith.constant dense<0.000000e+00> : vector<4x286xf32>
    %72 = tpu.matmul %70, %71, %cst_42 {dimension_numbers = #tpu.dot_dimension_numbers<[1], [0], [0], [1], [0, 0, 1, 1], [], []>} : vector<4x8xf32>, vector<8x286xf32>, vector<4x286xf32> -> vector<4x286xf32>
    %73 = arith.addf %68, %72 : vector<4x286xf32>
    %c2 = arith.constant 2 : index
    %c0_43 = arith.constant 0 : index
    %c0_44 = arith.constant 0 : index
    %74 = vector.load %arg5[%c2, %c0_43, %c0_44] : memref<9x4x8xf32, #tpu.memory_space<vmem>>, vector<1x4x8xf32>
    %75 = vector.shape_cast %74 : vector<1x4x8xf32> to vector<4x8xf32>
    %c0_45 = arith.constant 0 : index
    %c2_46 = arith.constant 2 : index
    %76 = vector.load %arg11[%c0_45, %c2_46] : memref<8x324xf32, #tpu.memory_space<vmem>>, vector<8x286xf32>
    %cst_47 = arith.constant dense<0.000000e+00> : vector<4x286xf32>
    %77 = tpu.matmul %75, %76, %cst_47 {dimension_numbers = #tpu.dot_dimension_numbers<[1], [0], [0], [1], [0, 0, 1, 1], [], []>} : vector<4x8xf32>, vector<8x286xf32>, vector<4x286xf32> -> vector<4x286xf32>
    %78 = arith.addf %73, %77 : vector<4x286xf32>
    %c3 = arith.constant 3 : index
    %c0_48 = arith.constant 0 : index
    %c0_49 = arith.constant 0 : index
    %79 = vector.load %arg5[%c3, %c0_48, %c0_49] : memref<9x4x8xf32, #tpu.memory_space<vmem>>, vector<1x4x8xf32>
    %80 = vector.shape_cast %79 : vector<1x4x8xf32> to vector<4x8xf32>
    %c0_50 = arith.constant 0 : index
    %c18 = arith.constant 18 : index
    %81 = vector.load %arg11[%c0_50, %c18] : memref<8x324xf32, #tpu.memory_space<vmem>>, vector<8x286xf32>
    %cst_51 = arith.constant dense<0.000000e+00> : vector<4x286xf32>
    %82 = tpu.matmul %80, %81, %cst_51 {dimension_numbers = #tpu.dot_dimension_numbers<[1], [0], [0], [1], [0, 0, 1, 1], [], []>} : vector<4x8xf32>, vector<8x286xf32>, vector<4x286xf32> -> vector<4x286xf32>
    %83 = arith.addf %78, %82 : vector<4x286xf32>
    %c4_52 = arith.constant 4 : index
    %c0_53 = arith.constant 0 : index
    %c0_54 = arith.constant 0 : index
    %84 = vector.load %arg5[%c4_52, %c0_53, %c0_54] : memref<9x4x8xf32, #tpu.memory_space<vmem>>, vector<1x4x8xf32>
    %85 = vector.shape_cast %84 : vector<1x4x8xf32> to vector<4x8xf32>
    %c0_55 = arith.constant 0 : index
    %c19_56 = arith.constant 19 : index
    %86 = vector.load %arg11[%c0_55, %c19_56] : memref<8x324xf32, #tpu.memory_space<vmem>>, vector<8x286xf32>
    %cst_57 = arith.constant dense<0.000000e+00> : vector<4x286xf32>
    %87 = tpu.matmul %85, %86, %cst_57 {dimension_numbers = #tpu.dot_dimension_numbers<[1], [0], [0], [1], [0, 0, 1, 1], [], []>} : vector<4x8xf32>, vector<8x286xf32>, vector<4x286xf32> -> vector<4x286xf32>
    %88 = arith.addf %83, %87 : vector<4x286xf32>
    %c5 = arith.constant 5 : index
    %c0_58 = arith.constant 0 : index
    %c0_59 = arith.constant 0 : index
    %89 = vector.load %arg5[%c5, %c0_58, %c0_59] : memref<9x4x8xf32, #tpu.memory_space<vmem>>, vector<1x4x8xf32>
    %90 = vector.shape_cast %89 : vector<1x4x8xf32> to vector<4x8xf32>
    %c0_60 = arith.constant 0 : index
    %c20 = arith.constant 20 : index
    %91 = vector.load %arg11[%c0_60, %c20] : memref<8x324xf32, #tpu.memory_space<vmem>>, vector<8x286xf32>
    %cst_61 = arith.constant dense<0.000000e+00> : vector<4x286xf32>
    %92 = tpu.matmul %90, %91, %cst_61 {dimension_numbers = #tpu.dot_dimension_numbers<[1], [0], [0], [1], [0, 0, 1, 1], [], []>} : vector<4x8xf32>, vector<8x286xf32>, vector<4x286xf32> -> vector<4x286xf32>
    %93 = arith.addf %88, %92 : vector<4x286xf32>
    %c6 = arith.constant 6 : index
    %c0_62 = arith.constant 0 : index
    %c0_63 = arith.constant 0 : index
    %94 = vector.load %arg5[%c6, %c0_62, %c0_63] : memref<9x4x8xf32, #tpu.memory_space<vmem>>, vector<1x4x8xf32>
    %95 = vector.shape_cast %94 : vector<1x4x8xf32> to vector<4x8xf32>
    %c0_64 = arith.constant 0 : index
    %c36 = arith.constant 36 : index
    %96 = vector.load %arg11[%c0_64, %c36] : memref<8x324xf32, #tpu.memory_space<vmem>>, vector<8x286xf32>
    %cst_65 = arith.constant dense<0.000000e+00> : vector<4x286xf32>
    %97 = tpu.matmul %95, %96, %cst_65 {dimension_numbers = #tpu.dot_dimension_numbers<[1], [0], [0], [1], [0, 0, 1, 1], [], []>} : vector<4x8xf32>, vector<8x286xf32>, vector<4x286xf32> -> vector<4x286xf32>
    %98 = arith.addf %93, %97 : vector<4x286xf32>
    %c7 = arith.constant 7 : index
    %c0_66 = arith.constant 0 : index
    %c0_67 = arith.constant 0 : index
    %99 = vector.load %arg5[%c7, %c0_66, %c0_67] : memref<9x4x8xf32, #tpu.memory_space<vmem>>, vector<1x4x8xf32>
    %100 = vector.shape_cast %99 : vector<1x4x8xf32> to vector<4x8xf32>
    %c0_68 = arith.constant 0 : index
    %c37_69 = arith.constant 37 : index
    %101 = vector.load %arg11[%c0_68, %c37_69] : memref<8x324xf32, #tpu.memory_space<vmem>>, vector<8x286xf32>
    %cst_70 = arith.constant dense<0.000000e+00> : vector<4x286xf32>
    %102 = tpu.matmul %100, %101, %cst_70 {dimension_numbers = #tpu.dot_dimension_numbers<[1], [0], [0], [1], [0, 0, 1, 1], [], []>} : vector<4x8xf32>, vector<8x286xf32>, vector<4x286xf32> -> vector<4x286xf32>
    %103 = arith.addf %98, %102 : vector<4x286xf32>
    %c8 = arith.constant 8 : index
    %c0_71 = arith.constant 0 : index
    %c0_72 = arith.constant 0 : index
    %104 = vector.load %arg5[%c8, %c0_71, %c0_72] : memref<9x4x8xf32, #tpu.memory_space<vmem>>, vector<1x4x8xf32>
    %105 = vector.shape_cast %104 : vector<1x4x8xf32> to vector<4x8xf32>
    %c0_73 = arith.constant 0 : index
    %c38 = arith.constant 38 : index
    %106 = vector.load %arg11[%c0_73, %c38] : memref<8x324xf32, #tpu.memory_space<vmem>>, vector<8x286xf32>
    %cst_74 = arith.constant dense<0.000000e+00> : vector<4x286xf32>
    %107 = tpu.matmul %105, %106, %cst_74 {dimension_numbers = #tpu.dot_dimension_numbers<[1], [0], [0], [1], [0, 0, 1, 1], [], []>} : vector<4x8xf32>, vector<8x286xf32>, vector<4x286xf32> -> vector<4x286xf32>
    %108 = arith.addf %103, %107 : vector<4x286xf32>
    %c0_75 = arith.constant 0 : index
    %c0_76 = arith.constant 0 : index
    %109 = vector.load %arg6[%c0_75, %c0_76] : memref<4x1xf32, #tpu.memory_space<vmem>>, vector<4x1xf32>
    %110 = vector.broadcast %109 : vector<4x1xf32> to vector<4x286xf32>
    %111 = arith.addf %108, %110 : vector<4x286xf32>
    %cst_77 = arith.constant 0.000000e+00 : f32
    %112 = vector.broadcast %cst_77 : f32 to vector<4x286xf32>
    %113 = arith.maximumf %111, %112 : vector<4x286xf32>
    %c0_78 = arith.constant 0 : index
    %c0_79 = arith.constant 0 : index
    %114 = vector.load %arg9[%c0_78, %c0_79] : memref<1x286xf32, #tpu.memory_space<vmem>>, vector<1x286xf32>
    %115 = vector.broadcast %114 : vector<1x286xf32> to vector<4x286xf32>
    %116 = arith.mulf %113, %115 : vector<4x286xf32>
    %cst_80 = arith.constant 0.000000e+00 : f32
    %117 = vector.broadcast %cst_80 : f32 to vector<4x19xf32>
    %c0_81 = arith.constant 0 : index
    %c0_82 = arith.constant 0 : index
    %118 = vector.load %arg12[%c0_81, %c0_82] : memref<4x324xf32, #tpu.memory_space<vmem>>, vector<4x19xf32>
    tpu.vector_store %arg12[%c0_81, %c0_82], %117 {strides = array<i32>} : memref<4x324xf32, #tpu.memory_space<vmem>>, vector<4x19xf32>,
    %cst_83 = arith.constant 0.000000e+00 : f32
    %119 = vector.broadcast %cst_83 : f32 to vector<4x19xf32>
    %c0_84 = arith.constant 0 : index
    %c305 = arith.constant 305 : index
    %120 = vector.load %arg12[%c0_84, %c305] : memref<4x324xf32, #tpu.memory_space<vmem>>, vector<4x19xf32>
    tpu.vector_store %arg12[%c0_84, %c305], %119 {strides = array<i32>} : memref<4x324xf32, #tpu.memory_space<vmem>>, vector<4x19xf32>,
    %c0_85 = arith.constant 0 : index
    %c19_86 = arith.constant 19 : index
    %121 = vector.load %arg12[%c0_85, %c19_86] : memref<4x324xf32, #tpu.memory_space<vmem>>, vector<4x286xf32>
    tpu.vector_store %arg12[%c0_85, %c19_86], %116 {strides = array<i32>} : memref<4x324xf32, #tpu.memory_space<vmem>>, vector<4x286xf32>,
    %cst_87 = arith.constant 0.000000e+00 : f32
    %122 = vector.broadcast %cst_87 : f32 to vector<4x286xf32>
    %c0_88 = arith.constant 0 : index
    %c0_89 = arith.constant 0 : index
    %c0_90 = arith.constant 0 : index
    %123 = vector.load %arg7[%c0_88, %c0_89, %c0_90] : memref<9x4x4xf32, #tpu.memory_space<vmem>>, vector<1x4x4xf32>
    %124 = vector.shape_cast %123 : vector<1x4x4xf32> to vector<4x4xf32>
    %c0_91 = arith.constant 0 : index
    %c0_92 = arith.constant 0 : index
    %125 = vector.load %arg12[%c0_91, %c0_92] : memref<4x324xf32, #tpu.memory_space<vmem>>, vector<4x286xf32>
    %cst_93 = arith.constant dense<0.000000e+00> : vector<4x286xf32>
    %126 = tpu.matmul %124, %125, %cst_93 {dimension_numbers = #tpu.dot_dimension_numbers<[1], [0], [0], [1], [0, 0, 1, 1], [], []>} : vector<4x4xf32>, vector<4x286xf32>, vector<4x286xf32> -> vector<4x286xf32>
    %127 = arith.addf %122, %126 : vector<4x286xf32>
    %c1_94 = arith.constant 1 : index
    %c0_95 = arith.constant 0 : index
    %c0_96 = arith.constant 0 : index
    %128 = vector.load %arg7[%c1_94, %c0_95, %c0_96] : memref<9x4x4xf32, #tpu.memory_space<vmem>>, vector<1x4x4xf32>
    %129 = vector.shape_cast %128 : vector<1x4x4xf32> to vector<4x4xf32>
    %c0_97 = arith.constant 0 : index
    %c1_98 = arith.constant 1 : index
    %130 = vector.load %arg12[%c0_97, %c1_98] : memref<4x324xf32, #tpu.memory_space<vmem>>, vector<4x286xf32>
    %cst_99 = arith.constant dense<0.000000e+00> : vector<4x286xf32>
    %131 = tpu.matmul %129, %130, %cst_99 {dimension_numbers = #tpu.dot_dimension_numbers<[1], [0], [0], [1], [0, 0, 1, 1], [], []>} : vector<4x4xf32>, vector<4x286xf32>, vector<4x286xf32> -> vector<4x286xf32>
    %132 = arith.addf %127, %131 : vector<4x286xf32>
    %c2_100 = arith.constant 2 : index
    %c0_101 = arith.constant 0 : index
    %c0_102 = arith.constant 0 : index
    %133 = vector.load %arg7[%c2_100, %c0_101, %c0_102] : memref<9x4x4xf32, #tpu.memory_space<vmem>>, vector<1x4x4xf32>
    %134 = vector.shape_cast %133 : vector<1x4x4xf32> to vector<4x4xf32>
    %c0_103 = arith.constant 0 : index
    %c2_104 = arith.constant 2 : index
    %135 = vector.load %arg12[%c0_103, %c2_104] : memref<4x324xf32, #tpu.memory_space<vmem>>, vector<4x286xf32>
    %cst_105 = arith.constant dense<0.000000e+00> : vector<4x286xf32>
    %136 = tpu.matmul %134, %135, %cst_105 {dimension_numbers = #tpu.dot_dimension_numbers<[1], [0], [0], [1], [0, 0, 1, 1], [], []>} : vector<4x4xf32>, vector<4x286xf32>, vector<4x286xf32> -> vector<4x286xf32>
    %137 = arith.addf %132, %136 : vector<4x286xf32>
    %c3_106 = arith.constant 3 : index
    %c0_107 = arith.constant 0 : index
    %c0_108 = arith.constant 0 : index
    %138 = vector.load %arg7[%c3_106, %c0_107, %c0_108] : memref<9x4x4xf32, #tpu.memory_space<vmem>>, vector<1x4x4xf32>
    %139 = vector.shape_cast %138 : vector<1x4x4xf32> to vector<4x4xf32>
    %c0_109 = arith.constant 0 : index
    %c18_110 = arith.constant 18 : index
    %140 = vector.load %arg12[%c0_109, %c18_110] : memref<4x324xf32, #tpu.memory_space<vmem>>, vector<4x286xf32>
    %cst_111 = arith.constant dense<0.000000e+00> : vector<4x286xf32>
    %141 = tpu.matmul %139, %140, %cst_111 {dimension_numbers = #tpu.dot_dimension_numbers<[1], [0], [0], [1], [0, 0, 1, 1], [], []>} : vector<4x4xf32>, vector<4x286xf32>, vector<4x286xf32> -> vector<4x286xf32>
    %142 = arith.addf %137, %141 : vector<4x286xf32>
    %c4_112 = arith.constant 4 : index
    %c0_113 = arith.constant 0 : index
    %c0_114 = arith.constant 0 : index
    %143 = vector.load %arg7[%c4_112, %c0_113, %c0_114] : memref<9x4x4xf32, #tpu.memory_space<vmem>>, vector<1x4x4xf32>
    %144 = vector.shape_cast %143 : vector<1x4x4xf32> to vector<4x4xf32>
    %c0_115 = arith.constant 0 : index
    %c19_116 = arith.constant 19 : index
    %145 = vector.load %arg12[%c0_115, %c19_116] : memref<4x324xf32, #tpu.memory_space<vmem>>, vector<4x286xf32>
    %cst_117 = arith.constant dense<0.000000e+00> : vector<4x286xf32>
    %146 = tpu.matmul %144, %145, %cst_117 {dimension_numbers = #tpu.dot_dimension_numbers<[1], [0], [0], [1], [0, 0, 1, 1], [], []>} : vector<4x4xf32>, vector<4x286xf32>, vector<4x286xf32> -> vector<4x286xf32>
    %147 = arith.addf %142, %146 : vector<4x286xf32>
    %c5_118 = arith.constant 5 : index
    %c0_119 = arith.constant 0 : index
    %c0_120 = arith.constant 0 : index
    %148 = vector.load %arg7[%c5_118, %c0_119, %c0_120] : memref<9x4x4xf32, #tpu.memory_space<vmem>>, vector<1x4x4xf32>
    %149 = vector.shape_cast %148 : vector<1x4x4xf32> to vector<4x4xf32>
    %c0_121 = arith.constant 0 : index
    %c20_122 = arith.constant 20 : index
    %150 = vector.load %arg12[%c0_121, %c20_122] : memref<4x324xf32, #tpu.memory_space<vmem>>, vector<4x286xf32>
    %cst_123 = arith.constant dense<0.000000e+00> : vector<4x286xf32>
    %151 = tpu.matmul %149, %150, %cst_123 {dimension_numbers = #tpu.dot_dimension_numbers<[1], [0], [0], [1], [0, 0, 1, 1], [], []>} : vector<4x4xf32>, vector<4x286xf32>, vector<4x286xf32> -> vector<4x286xf32>
    %152 = arith.addf %147, %151 : vector<4x286xf32>
    %c6_124 = arith.constant 6 : index
    %c0_125 = arith.constant 0 : index
    %c0_126 = arith.constant 0 : index
    %153 = vector.load %arg7[%c6_124, %c0_125, %c0_126] : memref<9x4x4xf32, #tpu.memory_space<vmem>>, vector<1x4x4xf32>
    %154 = vector.shape_cast %153 : vector<1x4x4xf32> to vector<4x4xf32>
    %c0_127 = arith.constant 0 : index
    %c36_128 = arith.constant 36 : index
    %155 = vector.load %arg12[%c0_127, %c36_128] : memref<4x324xf32, #tpu.memory_space<vmem>>, vector<4x286xf32>
    %cst_129 = arith.constant dense<0.000000e+00> : vector<4x286xf32>
    %156 = tpu.matmul %154, %155, %cst_129 {dimension_numbers = #tpu.dot_dimension_numbers<[1], [0], [0], [1], [0, 0, 1, 1], [], []>} : vector<4x4xf32>, vector<4x286xf32>, vector<4x286xf32> -> vector<4x286xf32>
    %157 = arith.addf %152, %156 : vector<4x286xf32>
    %c7_130 = arith.constant 7 : index
    %c0_131 = arith.constant 0 : index
    %c0_132 = arith.constant 0 : index
    %158 = vector.load %arg7[%c7_130, %c0_131, %c0_132] : memref<9x4x4xf32, #tpu.memory_space<vmem>>, vector<1x4x4xf32>
    %159 = vector.shape_cast %158 : vector<1x4x4xf32> to vector<4x4xf32>
    %c0_133 = arith.constant 0 : index
    %c37_134 = arith.constant 37 : index
    %160 = vector.load %arg12[%c0_133, %c37_134] : memref<4x324xf32, #tpu.memory_space<vmem>>, vector<4x286xf32>
    %cst_135 = arith.constant dense<0.000000e+00> : vector<4x286xf32>
    %161 = tpu.matmul %159, %160, %cst_135 {dimension_numbers = #tpu.dot_dimension_numbers<[1], [0], [0], [1], [0, 0, 1, 1], [], []>} : vector<4x4xf32>, vector<4x286xf32>, vector<4x286xf32> -> vector<4x286xf32>
    %162 = arith.addf %157, %161 : vector<4x286xf32>
    %c8_136 = arith.constant 8 : index
    %c0_137 = arith.constant 0 : index
    %c0_138 = arith.constant 0 : index
    %163 = vector.load %arg7[%c8_136, %c0_137, %c0_138] : memref<9x4x4xf32, #tpu.memory_space<vmem>>, vector<1x4x4xf32>
    %164 = vector.shape_cast %163 : vector<1x4x4xf32> to vector<4x4xf32>
    %c0_139 = arith.constant 0 : index
    %c38_140 = arith.constant 38 : index
    %165 = vector.load %arg12[%c0_139, %c38_140] : memref<4x324xf32, #tpu.memory_space<vmem>>, vector<4x286xf32>
    %cst_141 = arith.constant dense<0.000000e+00> : vector<4x286xf32>
    %166 = tpu.matmul %164, %165, %cst_141 {dimension_numbers = #tpu.dot_dimension_numbers<[1], [0], [0], [1], [0, 0, 1, 1], [], []>} : vector<4x4xf32>, vector<4x286xf32>, vector<4x286xf32> -> vector<4x286xf32>
    %167 = arith.addf %162, %166 : vector<4x286xf32>
    %c0_142 = arith.constant 0 : index
    %c0_143 = arith.constant 0 : index
    %168 = vector.load %arg8[%c0_142, %c0_143] : memref<4x1xf32, #tpu.memory_space<vmem>>, vector<4x1xf32>
    %169 = vector.broadcast %168 : vector<4x1xf32> to vector<4x286xf32>
    %170 = arith.addf %167, %169 : vector<4x286xf32>
    %cst_144 = arith.constant 0.000000e+00 : f32
    %171 = vector.broadcast %cst_144 : f32 to vector<4x286xf32>
    %172 = arith.maximumf %170, %171 : vector<4x286xf32>
    %c0_145 = arith.constant 0 : index
    %c0_146 = arith.constant 0 : index
    %c0_147 = arith.constant 0 : index
    %173 = vector.load %arg10[%c0_145, %c0_146, %c0_147] : memref<1x4x286xf32, #tpu.memory_space<vmem>>, vector<1x4x286xf32>
    %174 = vector.shape_cast %173 : vector<1x4x286xf32> to vector<4x286xf32>
    %175 = vector.shape_cast %172 : vector<4x286xf32> to vector<1x4x286xf32>
    tpu.vector_store %arg10[%c0_145, %c0_146, %c0_147], %175 {strides = array<i32>} : memref<1x4x286xf32, #tpu.memory_space<vmem>>, vector<1x4x286xf32>,
    return
  }
  func.func @transform_0(%arg0: i32) -> (i32, i32, i32, i32) {
    %c0_i32 = arith.constant 0 : i32
    %c0_i32_0 = arith.constant 0 : i32
    %c0_i32_1 = arith.constant 0 : i32
    %c0_i32_2 = arith.constant 0 : i32
    return %arg0, %c0_i32, %c0_i32_0, %c0_i32_1 : i32, i32, i32, i32
  }
  func.func @transform_1(%arg0: i32) -> (i32, i32, i32) {
    %c0_i32 = arith.constant 0 : i32
    %c0_i32_0 = arith.constant 0 : i32
    %c0_i32_1 = arith.constant 0 : i32
    return %arg0, %c0_i32, %c0_i32_0 : i32, i32, i32
  }
  func.func @transform_2(%arg0: i32) -> (i32, i32) {
    %c0_i32 = arith.constant 0 : i32
    %c0_i32_0 = arith.constant 0 : i32
    %c0_i32_1 = arith.constant 0 : i32
    return %c0_i32, %c0_i32_0 : i32, i32
  }
  func.func @transform_3(%arg0: i32) -> (i32, i32) {
    %c0_i32 = arith.constant 0 : i32
    %c0_i32_0 = arith.constant 0 : i32
    %c0_i32_1 = arith.constant 0 : i32
    return %c0_i32, %c0_i32_0 : i32, i32
  }
  func.func @transform_4(%arg0: i32) -> (i32, i32, i32) {
    %c0_i32 = arith.constant 0 : i32
    %c0_i32_0 = arith.constant 0 : i32
    %c0_i32_1 = arith.constant 0 : i32
    %c0_i32_2 = arith.constant 0 : i32
    return %c0_i32, %c0_i32_0, %c0_i32_1 : i32, i32, i32
  }
  func.func @transform_5(%arg0: i32) -> (i32, i32) {
    %c0_i32 = arith.constant 0 : i32
    %c0_i32_0 = arith.constant 0 : i32
    %c0_i32_1 = arith.constant 0 : i32
    return %c0_i32, %c0_i32_0 : i32, i32
  }
  func.func @transform_6(%arg0: i32) -> (i32, i32, i32) {
    %c0_i32 = arith.constant 0 : i32
    %c0_i32_0 = arith.constant 0 : i32
    %c0_i32_1 = arith.constant 0 : i32
    %c0_i32_2 = arith.constant 0 : i32
    return %c0_i32, %c0_i32_0, %c0_i32_1 : i32, i32, i32
  }
  func.func @transform_7(%arg0: i32) -> (i32, i32) {
    %c0_i32 = arith.constant 0 : i32
    %c0_i32_0 = arith.constant 0 : i32
    %c0_i32_1 = arith.constant 0 : i32
    return %c0_i32, %c0_i32_0 : i32, i32
  }
  func.func @transform_8(%arg0: i32) -> (i32, i32) {
    %c0_i32 = arith.constant 0 : i32
    %c0_i32_0 = arith.constant 0 : i32
    %c0_i32_1 = arith.constant 0 : i32
    return %c0_i32, %c0_i32_0 : i32, i32
  }
  func.func @transform_9(%arg0: i32) -> (i32, i32, i32) {
    %c0_i32 = arith.constant 0 : i32
    %c0_i32_0 = arith.constant 0 : i32
    %c0_i32_1 = arith.constant 0 : i32
    return %arg0, %c0_i32, %c0_i32_0 : i32, i32, i32
  }
}

</mosaic_0001>

<bundles_post_ra>
// kernel: up_forward.1
= control target key start
LH: loop header
LB: loop body
LE: loop exit
PB: predicated region body
PF: predicated region fallthrough
CT: control target
= control target key end

     0   :  { %s4727_s30 = smov 0   ;;  %s5218_s0 = inlined_call_operand.vmem [shape: f32[2,4,8,8], index: 0, kind: input, shape index: {}]   ;;  %s5219_s1 = inlined_call_operand.vmem [shape: f32[2,4,324], index: 1, kind: input, shape index: {}]   ;;  %s5220_s2 = inlined_call_operand.vmem [shape: f32[16,8], index: 2, kind: input, shape index: {}, may-alias: {2,3}]   ;;  %s5221_s3 = inlined_call_operand.vmem [shape: f32[16,8], index: 3, kind: input, shape index: {}, may-alias: {2,3}]   ;;  %s5222_s4 = inlined_call_operand.vmem [shape: f32[9,4,8], index: 4, kind: input, shape index: {}]   ;;  %s5223_s5 = inlined_call_operand.vmem [shape: f32[4,1], index: 5, kind: input, shape index: {}]   ;;  %s5224_s6 = inlined_call_operand.vmem [shape: f32[9,4,4], index: 6, kind: input, shape index: {}]   ;;  %s5225_s7 = inlined_call_operand.vmem [shape: f32[4,1], index: 7, kind: input, shape index: {}]   ;;  %s5226_s8 = inlined_call_operand.vmem [shape: f32[1,286], index: 8, kind: input, shape index: {}]   ;;  %s5227_s9 = inlined_call_operand.vmem [shape: f32[2,4,286], index: 9, kind: output, shape index: {}]  }
   0x1 LB: > { %s4250_s10 = sadd.s32 4294967295, %s4650_s30   ;;  %p4254_p0 = scmp.ge.s32.totalorder %s4650_s30, 1  ;;  %s4650_s30 = sphi %s4727_s30, %s19_s30  }
   0x2   : > { %p297_p1 = scmp.lt.s32.totalorder %s4650_s30, 3 }
   0x4   : > { %p298_p2 = pnand %p4254_p0, %p297_p1 }
   0x5   : > { %v357_v0 = vld [vmem:[%s5221_s3] sm:$0xff] (!%p298_p2)  ;;  %v358_v1 = vld [vmem:[%s5221_s3 + $0x8] sm:$0xff] (!%p298_p2)  ;;  %vm359_vm0 = vcmask (!%p298_p2), 64512   ;;  %v4652_v2 = vmov (!%p298_p2), 0.0|0.0   ;;  %v4653_v5 = vmov (!%p298_p2), 0.0   ;;  %p338_p3 = scmp.lt.s32.totalorder (!%p298_p2), %s4250_s10, 1 }
   0x6   : > { %301 = sbr.rel (%p298_p2) target bundleno = 1542 (0x606), region = 56  ;;  %4559 = vmatprep.subr.bf16.mxu0 (!%p298_p2), %v4652_v2  ;;  %4563 = vmatprep.subr.bf16.mxu1 (!%p298_p2), %v4652_v2  ;;  %v4560_v3 = vpack.c.bf16 (!%p298_p2), %v358_v1, %v357_v0  ;;  %vm4743_vm1 = vmpackc.low (!%p298_p2), %vm359_vm0, %vm359_vm0  ;;  %975 = vst [vmem:[#allocation2] sm:$0xf0] (!%p298_p2), %v4653_v5  ;;  %vm4654_vm2 = vmmov (!%p298_p2), 0   ;;  %vm973_vm3 = vcmask (!%p298_p2), 551936   ;;  %v658_v13 = vld [vmem:[%s5220_s2] sm:$0xff] (!%p298_p2) }
   0x7   : > { %976 = vst [vmem:[#allocation2 + $0x8] sm:$0xf0] (!%p298_p2), %v4653_v5  ;;  %4432 = vmatprep.mubr.msk.f32.mxu1 (!%p298_p2), %vm4654_vm2, %v4653_v5  ;;  %4425 = vmatprep.mubr.msk.f32.mxu0 (!%p298_p2), %vm4654_vm2, %v4653_v5  ;;  %v659_v16 = vld [vmem:[%s5220_s2 + $0x8] sm:$0xff] (!%p298_p2)  ;;  %vm985_vm4 = vcmask (!%p298_p2), 1045509   ;;  %vm988_vm5 = vcmask (!%p298_p2), 1046534   ;;  %vm991_vm6 = vcmask (!%p298_p2), 1047559  }
   0x8   : > { %4562 = vmatpush3.bf16.xpose.msk.msra.mxu0 (!%p298_p2), %vm4743_vm1, %v4560_v3  ;;  %4566 = vmatpush3.bf16.xpose.msk.msra.mxu1 (!%p298_p2), %vm4743_vm1, %v4560_v3  ;;  %s4655_s27 = smov (!%p298_p2), 15   ;;  %s4656_s28 = smov (!%p298_p2), 127   ;;  %vm977_vm7 = vcmask (!%p298_p2), 556036   ;;  %vm1067_vm8 = vcmask (!%p298_p2), 121860   ;;  %vm1154_vm9 = vcmask (!%p298_p2), 105476   ;;  %vm1165_vm10 = vcmask (!%p298_p2), 253052  }
   0x9   : > { %4567 = vmatprep.subr.bf16.mxu0 (!%p298_p2), %v4652_v2  ;;  %4571 = vmatprep.subr.bf16.mxu1 (!%p298_p2), %v4652_v2  ;;  %s4657_s29 = smov (!%p298_p2), 35   ;;  %s4658_s11 = smov (!%p298_p2), 125   ;;  %978 = vst.msk [vmem:[#allocation2 + $0x10] sm:$0xf0] (!%p298_p2), %vm977_vm7, %v4653_v5  ;;  %vm1078_vm11 = vcmask (!%p298_p2), 269452   ;;  %vm1094_vm12 = vcmask (!%p298_p2), 417052  }
   0xa   : > { %s4659_s12 = smov (!%p298_p2), 53   ;;  %s4660_s13 = smov (!%p298_p2), 107   ;;  %vm1106_vm13 = vcmask (!%p298_p2), 564652   ;;  %vm1118_vm14 = vcmask (!%p298_p2), 712252   ;;  %vm1130_vm15 = vcmask (!%p298_p2), 859852   ;;  %vm1032_vm7 = vcmask (!%p298_p2), 728652  }
   0xb   : > { %s4661_s14 = smov (!%p298_p2), 71   ;;  %s4663_s17 = smov (!%p298_p2), 89  }
   0xc   : > { %s4664_s18 = smov (!%p298_p2), 37   ;;  %s4666_s20 = smov (!%p298_p2), 55  }
   0xd   : > { %s5231_s10 = smov (!%p338_p3, %s4250_s10), 1  ;;  %s4667_s21 = smov 91  }
   0xe   : > { %s4360_s15 = sshll.u32 %s5231_s10, 5  ;;  %s4607_s16 = smul.u32 12, %s5231_s10 }
   0xf   : > { %s342_s19 = scalar_lea.vmem %s5218_s0, %s4360_s15  ;;  %s4662_s15 = smov 17  }
  0x10   : > { %s347_s22 = scalar_lea.vmem %s5219_s1, %s4607_s16  ;;  %v354_v6 = vld [vmem:[%s342_s19 + $0x8] sm:$0xff]  ;;  %v353_v7 = vld [vmem:[%s342_s19] sm:$0xff]  ;;  %v355_v11 = vld [vmem:[%s342_s19 + $0x10] sm:$0xff]  ;;  %s4669_s23 = smov 33  }
  0x11   : > { %v966_v8 = vld [vmem:[%s347_s22] sm:$0xff]  ;;  %v967_v9 = vld [vmem:[%s347_s22 + $0x8] sm:$0xf]  ;;  %4433 = vmatmul.mubr.msk.f32.vlgmr.msra.gmra.mrb[0].mxu1 %vm359_vm0, %v354_v6  ;;  %4426 = vmatmul.mubr.msk.f32.vlgmr.msra.gmra.mrb[0].mxu0 %vm359_vm0, %v353_v7  ;;  %v356_v12 = vld [vmem:[%s342_s19 + $0x18] sm:$0xff]  ;;  %s4665_s19 = smov 19   ;;  %s4668_s22 = smov 73  }
  0x12   : > { %v969_v10 = vcombine.high %v966_v8, %v966_v8  ;;  %971 = vst [vmem:[#allocation2] sm:$0xf] %v966_v8  ;;  %974 = vst.msk [vmem:[#allocation2 + $0x10] sm:$0xf] %vm973_vm3, %v967_v9  ;;  %4570 = vmatpush3.bf16.xpose.msk.msra.mxu0 %vm4743_vm1, %v4560_v3  ;;  %4574 = vmatpush3.bf16.xpose.msk.msra.mxu1 %vm4743_vm1, %v4560_v3  ;;  %s4670_s24 = smov 109   ;;  %vm1141_vm1 = vcmask 1007452  }
  0x13   : > { %4439 = vmatprep.mubr.msk.f32.mxu0 %vm4654_vm2, %v4653_v5  ;;  %4446 = vmatprep.mubr.msk.f32.mxu1 %vm4654_vm2, %v4653_v5  ;;  %vm1152_vm3 = vcmask 1048556   ;;  %s4671_s25 = smov 126   ;;  %s4672_s26 = smov 110  }
  0x14   : > { %972 = vst [vmem:[#allocation2 + $0x8] sm:$0xf] %v969_v10 }
  0x19   : > { %4440 = vmatmul.mubr.msk.f32.vlgmr.msra.gmra.mrb[2].mxu0 %vm359_vm0, %v355_v11  ;;  %4447 = vmatmul.mubr.msk.f32.vlgmr.msra.gmra.mrb[2].mxu1 %vm359_vm0, %v356_v12 }
  0x1a   : > { %4451 = vmatprep.mubr.msk.f32.mxu0 %vm359_vm0, %v658_v13  ;;  %4456 = vmatprep.mubr.msk.f32.mxu1 %vm359_vm0, %v658_v13 }
  0xe4   : > { %v508_v14 = vpop.f32.mrb[0].mxu1  ;;  %v435_v15 = vpop.f32.mrb[0].mxu0 }
  0xe5   : > { %v4434_v17 = vpop.f32.mrb[1].mxu1  ;;  %4454 = vmatprep.subr.mxu1 %v508_v14  ;;  %v4427_v18 = vpop.f32.mrb[1].mxu0  ;;  %4449 = vmatprep.subr.mxu0 %v435_v15 }
  0xe6   : > { %4455 = vmatpush3.msra.mxu1 %v508_v14  ;;  %4450 = vmatpush3.msra.mxu0 %v435_v15 }
  0xe7   : > { %4452 = vmatmul.mubr.msk.f32.vlgmr.msra.gmra.mrb[4].mxu0 %vm359_vm0, %v659_v16  ;;  %4457 = vmatmul.mubr.msk.f32.vlgmr.msra.gmra.mrb[4].mxu1 %vm359_vm0, %v659_v16 }
  0xe8   : > { %4461 = vmatprep.mubr.msk.f32.mxu0 %vm359_vm0, %v658_v13  ;;  %4466 = vmatprep.mubr.msk.f32.mxu1 %vm359_vm0, %v658_v13 }
  0xec   : > { %v581_v19 = vpop.f32.mrb[2].mxu0  ;;  %v654_v20 = vpop.f32.mrb[2].mxu1 }
  0xed   : > { %v4441_v21 = vpop.f32.mrb[3].mxu0  ;;  %v4448_v22 = vpop.f32.mrb[3].mxu1  ;;  %4459 = vmatprep.subr.mxu0 %v581_v19  ;;  %4464 = vmatprep.subr.mxu1 %v654_v20 }
  0xee   : > { %4460 = vmatpush3.msra.mxu0 %v581_v19  ;;  %4465 = vmatpush3.msra.mxu1 %v654_v20 }
  0xef   : > { %4462 = vmatmul.mubr.msk.f32.vlgmr.msra.gmra.mrb[6].mxu0 %vm359_vm0, %v659_v16  ;;  %4467 = vmatmul.mubr.msk.f32.vlgmr.msra.gmra.mrb[6].mxu1 %vm359_vm0, %v659_v16 }
  0xf0   : > { %4469 = vmatprep.subr.mxu1 %v4653_v5  ;;  %4471 = vmatprep.mubr.msk.f32.mxu1 %vm4654_vm2, %v4653_v5 }
  0xf1   : > { %1266 = vmatprep.mubr.f32.mxu0 %v4653_v5 }
 0x1ba   : > { %v4799_v23 = vpop.f32.mrb[4].mxu0  ;;  %v4801_v24 = vpop.f32.mrb[4].mxu1 }
 0x1bb   : > { %v4803_v25 = vpop.f32.mrb[5].mxu0  ;;  %v4805_v26 = vpop.f32.mrb[5].mxu1  ;;  %v1156_v27 = vrot.slane %v4799_v23, 2  ;;  %v1157_v28 = vrot.slane %v4801_v24, 1  ;;  %v1084_v29 = vrot.slane %v4799_v23, 4  ;;  %v1085_v30 = vrot.slane %v4801_v24, 3 }
 0x1bc   : > { %v1056_v31 = vrot.slane %v4803_v25, 2  ;;  %v1057_v32 = vrot.slane %v4805_v26, 1  ;;  %v1143_v33 = vrot.slane %v4799_v23, 1  ;;  %v1096_v34 = vrot.slane %v4799_v23, 5 }
 0x1bd   : > { %v1158_v35 = vsel %vm985_vm4, %v1157_v28, %v1156_v27  ;;  %v1086_v36 = vsel %vm985_vm4, %v1085_v30, %v1084_v29  ;;  %v1097_v37 = vrot.slane %v4801_v24, 4  ;;  %v1132_v38 = vrot.slane %v4801_v24, 7 }
 0x1be   : > { %v1058_v39 = vsel %vm985_vm4, %v1057_v32, %v1056_v31  ;;  %v1144_v40 = vsel %vm985_vm4, %v4801_v24, %v1143_v33  ;;  %v1108_v41 = vrot.slane %v4799_v23, 6  ;;  %v1109_v42 = vrot.slane %v4801_v24, 5 }
 0x1bf   : > { %v1098_v43 = vsel %vm985_vm4, %v1097_v37, %v1096_v34  ;;  %v1133_v44 = vsel %vm985_vm4, %v1132_v38, %v4799_v23  ;;  %v1069_v45 = vrot.slane %v4803_v25, 3  ;;  %v1070_v46 = vrot.slane %v4805_v26, 2 }
 0x1c0   : > { %v1110_v47 = vsel %vm985_vm4, %v1109_v42, %v1108_v41  ;;  %v1120_v48 = vrot.slane %v4799_v23, 7  ;;  %v1121_v49 = vrot.slane %v4801_v24, 6  ;;  %v998_v50 = vrot.slane %v4803_v25, 5 }
 0x1c1   : > { %v1071_v51 = vsel %vm985_vm4, %v1070_v46, %v1069_v45  ;;  %v999_v52 = vrot.slane %v4805_v26, 4  ;;  %v983_v53 = vrot.slane %v4803_v25, 4  ;;  %v984_v54 = vrot.slane %v4805_v26, 3 }
 0x1c2   : > { %v4837_v55 = vpop.f32.mrb[6].mxu0  ;;  %v4839_v56 = vpop.f32.mrb[6].mxu1  ;;  %v1122_v57 = vsel %vm985_vm4, %v1121_v49, %v1120_v48  ;;  %v1010_v58 = vrot.slane %v4803_v25, 6  ;;  %v1011_v59 = vrot.slane %v4805_v26, 5  ;;  %v1034_v60 = vrot.slane %v4805_v26, 7 }
 0x1c3   : > { %v4845_v61 = vpop.f32.mrb[7].mxu0  ;;  %v4847_v62 = vpop.f32.mrb[7].mxu1  ;;  %v1159_v63 = vsel %vm988_vm5, %v4837_v55, %v1158_v35  ;;  %v1160_v0 = vrot.slane %v4839_v56, 7  ;;  %v1087_v1 = vrot.slane %v4837_v55, 2  ;;  %v1089_v2 = vrot.slane %v4839_v56, 1 }
 0x1c4   : > { %v1059_v3 = vsel %vm988_vm5, %v4845_v61, %v1058_v39  ;;  %v1060_v4 = vrot.slane %v4847_v62, 7  ;;  %v1145_v6 = vrot.slane %v4837_v55, 7  ;;  %v1147_v7 = vrot.slane %v4839_v56, 6 }
 0x1c5   : > { %v1161_v8 = vsel %vm991_vm6, %v1160_v0, %v1159_v63  ;;  %v1088_v9 = vsel %vm988_vm5, %v1087_v1, %v1086_v36  ;;  %v1099_v10 = vrot.slane %v4837_v55, 3  ;;  %v1101_v11 = vrot.slane %v4839_v56, 2 }
 0x1c6   : > { %1162 = vrot.lane.b32.xlu1 %v1161_v8, %s4655_s27  ;;  %v1061_v12 = vsel %vm991_vm6, %v1060_v4, %v1059_v3  ;;  %v1090_v13 = vsel %vm991_vm6, %v1089_v2, %v1088_v9  ;;  %v1146_v14 = vsel %vm988_vm5, %v1145_v6, %v1144_v40  ;;  %v1134_v15 = vrot.slane %v4837_v55, 6  ;;  %s4673_s27 = smov 108  }
 0x1c7   : > { %1062 = vrot.lane.b32.xlu0 %v1061_v12, %s4656_s28  ;;  %v1148_v16 = vsel %vm991_vm6, %v1147_v7, %v1146_v14  ;;  %v1100_v17 = vsel %vm988_vm5, %v1099_v10, %v1098_v43  ;;  %v1136_v18 = vrot.slane %v4839_v56, 5  ;;  %v1111_v19 = vrot.slane %v4837_v55, 4 }
 0x1c8   : > { %v1102_v20 = vsel %vm991_vm6, %v1101_v11, %v1100_v17  ;;  %v1135_v21 = vsel %vm988_vm5, %v1134_v15, %v1133_v44  ;;  %v1113_v22 = vrot.slane %v4839_v56, 3  ;;  %v1072_v27 = vrot.slane %v4845_v61, 1 }
 0x1c9   : > { %v1137_v28 = vsel %vm991_vm6, %v1136_v18, %v1135_v21  ;;  %v1112_v29 = vsel %vm988_vm5, %v1111_v19, %v1110_v47  ;;  %v1123_v30 = vrot.slane %v4837_v55, 5  ;;  %v1125_v31 = vrot.slane %v4839_v56, 4 }
 0x1ca   : > { %1091 = vrot.lane.b32.xlu1 %v1090_v13, %s4657_s29  ;;  %v1114_v32 = vsel %vm991_vm6, %v1113_v22, %v1112_v29  ;;  %v1073_v33 = vsel %vm988_vm5, %v1072_v27, %v1071_v51  ;;  %v1000_v34 = vsel %vm985_vm4, %v999_v52, %v998_v50  ;;  %v1001_v35 = vrot.slane %v4845_v61, 3  ;;  %s4674_s29 = smov 92  }
 0x1cb   : > { %1149 = vrot.lane.b32.xlu0 %v1148_v16, %s4658_s11  ;;  %v1074_v36 = vsel %vm991_vm6, %v4847_v62, %v1073_v33  ;;  %v1124_v37 = vsel %vm988_vm5, %v1123_v30, %v1122_v57  ;;  %v1003_v38 = vrot.slane %v4847_v62, 2  ;;  %v986_v39 = vsel %vm985_vm4, %v984_v54, %v983_v53  ;;  %s4675_s11 = smov 90  }
 0x1cc   : > { %v1126_v40 = vsel %vm991_vm6, %v1125_v31, %v1124_v37  ;;  %v1002_v41 = vsel %vm988_vm5, %v1001_v35, %v1000_v34  ;;  %v987_v42 = vrot.slane %v4845_v61, 2  ;;  %v990_v43 = vrot.slane %v4847_v62, 1 }
 0x1cd   : > { %v1004_v44 = vsel %vm991_vm6, %v1003_v38, %v1002_v41  ;;  %v1012_v45 = vsel %vm985_vm4, %v1011_v59, %v1010_v58  ;;  %v1013_v46 = vrot.slane %v4845_v61, 4  ;;  %v1015_v47 = vrot.slane %v4847_v62, 3  ;;  %v1178_v41 = vld [vmem:[%s5222_s4] sm:$0xf] }
 0x1ce   : > { %1103 = vrot.lane.b32.xlu1 %v1102_v20, %s4659_s12  ;;  %v989_v48 = vsel %vm988_vm5, %v987_v42, %v986_v39  ;;  %v1035_v49 = vsel %vm985_vm4, %v1034_v60, %v4803_v25  ;;  %v1036_v50 = vrot.slane %v4845_v61, 6  ;;  %v1038_v51 = vrot.slane %v4847_v62, 5 }
 0x1cf   : > { %1138 = vrot.lane.b32.xlu0 %v1137_v28, %s4660_s13  ;;  %v992_v52 = vsel %vm991_vm6, %v990_v43, %v989_v48  ;;  %v1014_v53 = vsel %vm988_vm5, %v1013_v46, %v1012_v45  ;;  %v1022_v54 = vrot.slane %v4803_v25, 7  ;;  %v1023_v57 = vrot.slane %v4805_v26, 6  ;;  %v4284_v45 = vld [vmem:[%s5222_s4 + $0x8] sm:$0xf]  ;;  %v4287_v48 = vld [vmem:[%s5222_s4 + $0xc] sm:$0xf] }
 0x1d0   : > { %v1016_v58 = vsel %vm991_vm6, %v1015_v47, %v1014_v53  ;;  %v1037_v59 = vsel %vm988_vm5, %v1036_v50, %v1035_v49  ;;  %v1025_v60 = vrot.slane %v4845_v61, 5  ;;  %v1027_v63 = vrot.slane %v4847_v62, 4  ;;  %v4290_v53 = vld [vmem:[%s5222_s4 + $0x10] sm:$0xf] }
 0x1d1   : > { %v1039_v0 = vsel %vm991_vm6, %v1038_v51, %v1037_v59  ;;  %v1024_v1 = vsel %vm985_vm4, %v1023_v57, %v1022_v54  ;;  %v1167_v2 = vrot.slane %v4799_v23, 3  ;;  %v1168_v3 = vrot.slane %v4801_v24, 2 }
 0x1d2   : > { %1115 = vrot.lane.b32.xlu1 %v1114_v32, %s4661_s14  ;;  %v1026_v4 = vsel %vm988_vm5, %v1025_v60, %v1024_v1  ;;  %v1170_v6 = vrot.slane %v4837_v55, 1  ;;  %v1045_v7 = vrot.slane %v4803_v25, 1  ;;  %v1047_v8 = vrot.slane %v4845_v61, 7  ;;  %v2614_v32 = vld [vmem:[%s5223_s5] sm:$0xf] }
 0x1d3   : > { %1075 = vrot.lane.b32.xlu0 %v1074_v36, %s4662_s15  ;;  %v1028_v9 = vsel %vm991_vm6, %v1027_v63, %v1026_v4  ;;  %v1169_v10 = vsel %vm985_vm4, %v1168_v3, %v1167_v2  ;;  %v1049_v23 = vrot.slane %v4847_v62, 6  ;;  %v4676_v33 = vmov 0   ;;  %v4279_v36 = vld [vmem:[%s5222_s4 + $0x4] sm:$0xf]  ;;  %v4293_v63 = vld [vmem:[%s5222_s4 + $0x14] sm:$0xf] }
 0x1d4   : > { %v1171_v24 = vsel %vm988_vm5, %v1170_v6, %v1169_v10  ;;  %v1046_v11 = vsel %vm985_vm4, %v4805_v26, %v1045_v7  ;;  %vm996_vm4 = vcmask 285852   ;;  %4641 = vset.pattern.permute.xlu0 %v4676_v33  ;;  %v4296_v4 = vld [vmem:[%s5222_s4 + $0x18] sm:$0xf] }
 0x1d5   : > { %v1172_v25 = vsel %vm991_vm6, %v4839_v56, %v1171_v24  ;;  %v1048_v55 = vsel %vm988_vm5, %v1047_v8, %v1046_v11  ;;  %vm1008_vm5 = vcmask 433452  }
 0x1d6   : > { %1127 = vrot.lane.b32.xlu1 %v1126_v40, %s4663_s17  ;;  %v1050_v61 = vsel %vm991_vm6, %v1049_v23, %v1048_v55  ;;  %vm1020_vm6 = vcmask 581052   ;;  %v4299_v23 = vld [vmem:[%s5222_s4 + $0x1c] sm:$0xf]  ;;  %v4302_v55 = vld [vmem:[%s5222_s4 + $0x20] sm:$0xf] }
 0x1d7   : > { %1005 = vrot.lane.b32.xlu0 %v1004_v44, %s4664_s18 }
 0x1da   : > { %993 = vrot.lane.b32.xlu1 %v992_v52, %s4665_s19 }
 0x1db   : > { %1017 = vrot.lane.b32.xlu0 %v1016_v58, %s4666_s20 }
 0x1de   : > { %1040 = vrot.lane.b32.xlu1 %v1039_v0, %s4667_s21 }
 0x1df   : > { %1029 = vrot.lane.b32.xlu0 %v1028_v9, %s4668_s22 }
 0x1e2   : > { %1173 = vrot.lane.b32.xlu1 %v1172_v25, %s4669_s23 }
 0x1e3   : > { %1051 = vrot.lane.b32.xlu0 %v1050_v61, %s4670_s24 }
 0x238   : > { %v1163_v26 = vpop.permute.xlu1 %1162 }
 0x239   : > { %v1063_v56 = vpop.permute.xlu0 %1062 }
 0x23a   : > { %1068 = vst.msk [vmem:[#allocation2 + $0x8] sm:$0xf0] %vm1067_vm8, %v1063_v56  ;;  %vm1043_vm8 = vcmask 876252  }
 0x23c   : > { %v1092_v62 = vpop.permute.xlu1 %1091 }
 0x23d   : > { %v1150_v12 = vpop.permute.xlu0 %1149 }
 0x23e   : > { %1155 = vst.msk [vmem:[#allocation2 + $0x10] sm:$0xf0] %vm1154_vm9, %v1150_v12  ;;  %vm1176_vm9 = vcmask 400652  }
 0x23f   : > { %1166 = vst.msk [vmem:[#allocation2 + $0x10] sm:$0xf0] %vm1165_vm10, %v1163_v26  ;;  %vm1054_vm10 = vcmask 1023852  }
 0x240   : > { %v1104_v13 = vpop.permute.xlu1 %1103 }
 0x241   : > { %v1139_v14 = vpop.permute.xlu0 %1138 }
 0x244   : > { %v1116_v15 = vpop.permute.xlu1 %1115 }
 0x245   : > { %v1076_v16 = vpop.permute.xlu0 %1075 }
 0x246   : > { %1079 = vst.msk [vmem:[#allocation2 + $0x8] sm:$0xf0] %vm1078_vm11, %v1076_v16  ;;  %vm1065_vm11 = vcmask 1048572  }
 0x247   : > { %1095 = vst.msk [vmem:[#allocation2 + $0x8] sm:$0xf0] %vm1094_vm12, %v1092_v62  ;;  %vm1193_vm12 = vcmask 1039360  }
 0x248   : > { %v1128_v17 = vpop.permute.xlu1 %1127  ;;  %1107 = vst.msk [vmem:[#allocation2 + $0x8] sm:$0xf0] %vm1106_vm13, %v1104_v13  ;;  %vm1495_vm13 = vcmask 1031168  }
 0x249   : > { %1119 = vst.msk [vmem:[#allocation2 + $0x8] sm:$0xf0] %vm1118_vm14, %v1116_v15  ;;  %v1006_v18 = vpop.permute.xlu0 %1005  ;;  %vm1656_vm14 = vcmask 900096  }
 0x24a   : > { %1131 = vst.msk [vmem:[#allocation2 + $0x8] sm:$0xf0] %vm1130_vm15, %v1128_v17  ;;  %vm1817_vm15 = vcmask 891904  }
 0x24b   : > { %1142 = vst.msk [vmem:[#allocation2 + $0x8] sm:$0xf0] %vm1141_vm1, %v1139_v14  ;;  %vm1978_vm1 = vcmask 883712  }
 0x24c   : > { %1153 = vst.msk [vmem:[#allocation2 + $0x8] sm:$0xf0] %vm1152_vm3, %v1150_v12  ;;  %v994_v19 = vpop.permute.xlu1 %993  ;;  %vm2139_vm3 = vcmask 752640  }
 0x24d   : > { %997 = vst.msk [vmem:[#allocation2] sm:$0xf0] %vm996_vm4, %v994_v19  ;;  %v1018_v20 = vpop.permute.xlu0 %1017  ;;  %vm2300_vm4 = vcmask 744448  }
 0x24e   : > { %1009 = vst.msk [vmem:[#allocation2] sm:$0xf0] %vm1008_vm5, %v1006_v18  ;;  %vm2461_vm5 = vcmask 736256  }
 0x24f   : > { %1021 = vst.msk [vmem:[#allocation2] sm:$0xf0] %vm1020_vm6, %v1018_v20  ;;  %vm2646_vm6 = vcmask 150528  }
 0x250   : > { %v1041_v21 = vpop.permute.xlu1 %1040  ;;  %2647 = vst.msk [vmem:[#allocation3] sm:$0xf] %vm2646_vm6, %v4653_v5  ;;  %vm2690_vm6 = vcmask 1043456  }
 0x251   : > { %v1030_v22 = vpop.permute.xlu0 %1029 }
 0x252   : > { %1033 = vst.msk [vmem:[#allocation2] sm:$0xf0] %vm1032_vm7, %v1030_v22  ;;  %vm2664_vm7 = vcmask 1043608  }
 0x253   : > { %v1180_v27 = vld [vmem:[#allocation2 + $0x8] sm:$0xff]  ;;  %1044 = vst.msk [vmem:[#allocation2] sm:$0xf0] %vm1043_vm8, %v1041_v21  ;;  %vm2665_vm8 = vcmask 1047556  }
 0x254   : > { %1189 = vrot.lane.b32.xlu0 %v1180_v27, %s4656_s28  ;;  %v1174_v28 = vpop.permute.xlu1 %1173 }
 0x255   : > { %1177 = vst.msk [vmem:[#allocation2 + $0x10] sm:$0xf0] %vm1176_vm9, %v1174_v28  ;;  %v1052_v29 = vpop.permute.xlu0 %1051  ;;  %vm2659_vm9 = vcmask 154624  }
 0x256   : > { %1055 = vst.msk [vmem:[#allocation2] sm:$0xf0] %vm1054_vm10, %v1052_v29  ;;  %vm2666_vm10 = vmor %vm2665_vm8, %vm2664_vm7 }
 0x257   : > { %1066 = vst.msk [vmem:[#allocation2] sm:$0xf0] %vm1065_vm11, %v1063_v56  ;;  %vm2668_vm11 = vcmask 396288  }
 0x25c   : > { %v1181_v30 = vld [vmem:[#allocation2 + $0x10] sm:$0xff] }
 0x25d   : > { %1191 = vrot.lane.b32.xlu1 %v1181_v30, %s4656_s28 }
 0x25e   : > { %v1179_v31 = vld [vmem:[#allocation2] sm:$0xff] }
 0x25f   : > { %1187 = vrot.lane.b32.xlu0 %v1179_v31, %s4656_s28 }
 0x261   : > { %1491 = vrot.lane.b32.xlu1 %v1180_v27, %s4671_s25 }
 0x263   : > { %1493 = vrot.lane.b32.xlu0 %v1181_v30, %s4671_s25 }
 0x265   : > { %1489 = vrot.lane.b32.xlu1 %v1179_v31, %s4671_s25 }
 0x267   : > { %1652 = vrot.lane.b32.xlu0 %v1180_v27, %s4672_s26 }
 0x269   : > { %1654 = vrot.lane.b32.xlu1 %v1181_v30, %s4672_s26 }
 0x26b   : > { %1650 = vrot.lane.b32.xlu0 %v1179_v31, %s4672_s26 }
 0x26d   : > { %1813 = vrot.lane.b32.xlu1 %v1180_v27, %s4670_s24 }
 0x26f   : > { %1815 = vrot.lane.b32.xlu0 %v1181_v30, %s4670_s24 }
 0x271   : > { %1811 = vrot.lane.b32.xlu1 %v1179_v31, %s4670_s24 }
 0x273   : > { %1974 = vrot.lane.b32.xlu0 %v1180_v27, %s4673_s27 }
 0x275   : > { %1976 = vrot.lane.b32.xlu1 %v1181_v30, %s4673_s27 }
 0x277   : > { %1972 = vrot.lane.b32.xlu0 %v1179_v31, %s4673_s27 }
 0x279   : > { %2135 = vrot.lane.b32.xlu1 %v1180_v27, %s4674_s29 }
 0x27b   : > { %2137 = vrot.lane.b32.xlu0 %v1181_v30, %s4674_s29 }
 0x27d   : > { %2133 = vrot.lane.b32.xlu1 %v1179_v31, %s4674_s29 }
 0x27f   : > { %2296 = vrot.lane.b32.xlu0 %v1180_v27, %s4667_s21 }
 0x281   : > { %2298 = vrot.lane.b32.xlu1 %v1181_v30, %s4667_s21 }
 0x283   : > { %2294 = vrot.lane.b32.xlu0 %v1179_v31, %s4667_s21 }
 0x285   : > { %2457 = vrot.lane.b32.xlu1 %v1180_v27, %s4675_s11 }
 0x287   : > { %2459 = vrot.lane.b32.xlu0 %v1181_v30, %s4675_s11 }
 0x289   : > { %2455 = vrot.lane.b32.xlu1 %v1179_v31, %s4675_s11 }
 0x28b   : > { %2617 = vperm.xlu0 %4641, %v2614_v32  }
 0x2c6   : > { %v1190_v34 = vpop.permute.xlu0 %1189 }
 0x2cf   : > { %v1192_v35 = vpop.permute.xlu1 %1191 }
 0x2d0   : > { %4470 = vmatpush3.msra.mxu1 %v1192_v35  ;;  %v1195_v37 = vsel %vm1193_vm12, %v1190_v34, %v1192_v35 }
 0x2d1   : > { %v1188_v38 = vpop.permute.xlu0 %1187  ;;  %1202 = vmatprep.subr.mxu0 %v1195_v37  ;;  %4474 = vmatprep.subr.mxu1 %v4653_v5 }
 0x2d2   : > { %v1194_v39 = vsel %vm1193_vm12, %v1188_v38, %v1190_v34  ;;  %4472 = vmatmul.mubr.msk.f32.vlgmr.msra.gmra.mrb[8].mxu1 %vm359_vm0, %v4279_v36 }
 0x2d3   : > { %4475 = vmatpush3.msra.mxu1 %v1181_v30  ;;  %1203 = vmatpush1.msra.mxu0 %v1194_v39  ;;  %v1492_v40 = vpop.permute.xlu1 %1491 }
 0x2d4   : > { %4280 = vmatmul.mubr.msk.f32.vlgmr.msra.gmra.mrb[8].mxu0 %vm359_vm0, %v4279_v36  ;;  %1346 = vmatprep.subr.mxu0 %v1180_v27 }
 0x2d5   : > { %v1494_v42 = vpop.permute.xlu0 %1493  ;;  %1347 = vmatpush1.msra.mxu0 %v1179_v31  ;;  %4476 = vmatprep.mubr.msk.f32.mxu1 %vm4654_vm2, %v4653_v5 }
 0x2d6   : > { %4479 = vmatprep.subr.mxu1 %v4653_v5  ;;  %4477 = vmatmul.mubr.msk.f32.vlgmr.msra.gmra.mrb[10].mxu1 %vm359_vm0, %v1178_v41  ;;  %v1497_v43 = vsel %vm1495_vm13, %v1492_v40, %v1494_v42 }
 0x2d7   : > { %4480 = vmatpush3.msra.mxu1 %v1494_v42  ;;  %1504 = vmatprep.subr.mxu0 %v1497_v43  ;;  %v1490_v44 = vpop.permute.xlu1 %1489 }
 0x2d8   : > { %1410 = vmatprep.mubr.f32.mxu0 %v4653_v5  ;;  %4481 = vmatprep.mubr.msk.f32.mxu1 %vm4654_vm2, %v4653_v5  ;;  %v1496_v49 = vsel %vm1495_vm13, %v1490_v44, %v1492_v40 }
 0x2d9   : > { %v1653_v46 = vpop.permute.xlu0 %1652  ;;  %4484 = vmatprep.subr.mxu1 %v4653_v5 }
 0x2da   : > { %4482 = vmatmul.mubr.msk.f32.vlgmr.msra.gmra.mrb[12].mxu1 %vm359_vm0, %v4284_v45 }
 0x2db   : > { %v1655_v47 = vpop.permute.xlu1 %1654  ;;  %4486 = vmatprep.mubr.msk.f32.mxu1 %vm4654_vm2, %v4653_v5 }
 0x2dc   : > { %4282 = vmatmul.mubr.msk.f32.vlgmr.msra.gmra.mrb[8].mxu0 %vm359_vm0, %v1178_v41  ;;  %4485 = vmatpush3.msra.mxu1 %v1655_v47  ;;  %v1658_v50 = vsel %vm1656_vm14, %v1653_v46, %v1655_v47 }
 0x2dd   : > { %1505 = vmatpush1.msra.mxu0 %v1496_v49  ;;  %v1651_v51 = vpop.permute.xlu0 %1650  ;;  %4489 = vmatprep.subr.mxu1 %v4653_v5 }
 0x2de   : > { %1665 = vmatprep.subr.mxu0 %v1658_v50  ;;  %4487 = vmatmul.mubr.msk.f32.vlgmr.msra.gmra.mrb[14].mxu1 %vm359_vm0, %v4287_v48  ;;  %v1657_v58 = vsel %vm1656_vm14, %v1651_v51, %v1653_v46  ;;  %v2628_v46 = vlaneseq }
 0x2df   : > { %v1814_v52 = vpop.permute.xlu1 %1813  ;;  %1568 = vmatprep.mubr.f32.mxu0 %v4653_v5  ;;  %4491 = vmatprep.mubr.msk.f32.mxu1 %vm4654_vm2, %v4653_v5 }
 0x2e0   : > { %v2629_v47 = vshrl.u32 %v2628_v46, 7 }
 0x2e1   : > { %v1816_v54 = vpop.permute.xlu0 %1815 }
 0x2e2   : > { %4490 = vmatpush3.msra.mxu1 %v1816_v54  ;;  %v1819_v60 = vsel %vm1817_vm15, %v1814_v52, %v1816_v54  ;;  %v2634_v49 = vsub.s32 1, %v2629_v47 }
 0x2e3   : > { %v1812_v57 = vpop.permute.xlu1 %1811  ;;  %4494 = vmatprep.subr.mxu1 %v4653_v5  ;;  %4492 = vmatmul.mubr.msk.f32.vlgmr.msra.gmra.mrb[16].mxu1 %vm359_vm0, %v4290_v53 }
 0x2e4   : > { %4285 = vmatmul.mubr.msk.f32.vlgmr.msra.gmra.mrb[8].mxu0 %vm359_vm0, %v4284_v45  ;;  %4496 = vmatprep.mubr.msk.f32.mxu1 %vm4654_vm2, %v4653_v5  ;;  %v1818_v3 = vsel %vm1817_vm15, %v1812_v57, %v1814_v52  ;;  %v2626_v52 = vld [vmem:[%s5226_s8] sm:$0x7] }
 0x2e5   : > { %1666 = vmatpush1.msra.mxu0 %v1657_v58  ;;  %v1975_v59 = vpop.permute.xlu0 %1974  ;;  %1729 = vmatprep.mubr.f32.mxu0 %v4653_v5 }
 0x2e6   : > { %1826 = vmatprep.subr.mxu0 %v1819_v60 }
 0x2e7   : > { %v1977_v0 = vpop.permute.xlu1 %1976 }
 0x2e8   : > { %4495 = vmatpush3.msra.mxu1 %v1977_v0  ;;  %v1980_v7 = vsel %vm1978_vm1, %v1975_v59, %v1977_v0 }
 0x2e9   : > { %v1973_v1 = vpop.permute.xlu0 %1972  ;;  %4499 = vmatprep.subr.mxu1 %v4653_v5  ;;  %4497 = vmatmul.mubr.msk.f32.vlgmr.msra.gmra.mrb[18].mxu1 %vm359_vm0, %v4293_v63 }
 0x2ea   : > { %4501 = vmatprep.mubr.msk.f32.mxu1 %vm4654_vm2, %v4653_v5  ;;  %v1979_v24 = vsel %vm1978_vm1, %v1973_v1, %v1975_v59  ;;  %v2635_v59 = vrot.slane %v2626_v52, %v2634_v49  ;;  %v2638_v1 = vsub.s32 2, %v2629_v47 }
 0x2eb   : > { %v2136_v2 = vpop.permute.xlu1 %2135 }
 0x2ec   : > { %4288 = vmatmul.mubr.msk.f32.vlgmr.msra.gmra.mrb[8].mxu0 %vm359_vm0, %v4287_v48  ;;  %v2630_v48 = vsub.s32 0, %v2629_v47 }
 0x2ed   : > { %1827 = vmatpush1.msra.mxu0 %v1818_v3  ;;  %v2138_v6 = vpop.permute.xlu0 %2137  ;;  %1890 = vmatprep.mubr.f32.mxu0 %v4653_v5 }
 0x2ee   : > { %1987 = vmatprep.subr.mxu0 %v1980_v7  ;;  %4500 = vmatpush3.msra.mxu1 %v2138_v6  ;;  %v2141_v25 = vsel %vm2139_vm3, %v2136_v2, %v2138_v6  ;;  %v2631_v54 = vrot.slane %v2626_v52, %v2630_v48  ;;  %v2639_v7 = vrot.slane %v2626_v52, %v2638_v1  ;;  %v4352_v1 = vld [vmem:[%s5224_s6 + $0x20] sm:$0xf] }
 0x2ef   : > { %v2134_v8 = vpop.permute.xlu1 %2133  ;;  %4504 = vmatprep.subr.mxu1 %v4653_v5  ;;  %4502 = vmatmul.mubr.msk.f32.vlgmr.msra.gmra.mrb[20].mxu1 %vm359_vm0, %v4296_v4 }
 0x2f0   : > { %4506 = vmatprep.mubr.msk.f32.mxu1 %vm4654_vm2, %v4653_v5  ;;  %v2140_v26 = vsel %vm2139_vm3, %v2134_v8, %v2136_v2 }
 0x2f1   : > { %v2297_v9 = vpop.permute.xlu0 %2296 }
 0x2f3   : > { %v2299_v10 = vpop.permute.xlu1 %2298 }
 0x2f4   : > { %4291 = vmatmul.mubr.msk.f32.vlgmr.msra.gmra.mrb[8].mxu0 %vm359_vm0, %v4290_v53  ;;  %4505 = vmatpush3.msra.mxu1 %v2299_v10  ;;  %v2302_v56 = vsel %vm2300_vm4, %v2297_v9, %v2299_v10 }
 0x2f5   : > { %1988 = vmatpush1.msra.mxu0 %v1979_v24  ;;  %v2295_v11 = vpop.permute.xlu0 %2294  ;;  %4509 = vmatprep.subr.mxu1 %v4653_v5 }
 0x2f6   : > { %2148 = vmatprep.subr.mxu0 %v2141_v25  ;;  %4507 = vmatmul.mubr.msk.f32.vlgmr.msra.gmra.mrb[22].mxu1 %vm359_vm0, %v4299_v23  ;;  %v2301_v12 = vsel %vm2300_vm4, %v2295_v11, %v2297_v9 }
 0x2f7   : > { %2051 = vmatprep.mubr.f32.mxu0 %v4653_v5  ;;  %4511 = vmatprep.mubr.msk.f32.mxu1 %vm4654_vm2, %v4653_v5  ;;  %v2458_v62 = vpop.permute.xlu1 %2457 }
 0x2f9   : > { %v2460_v61 = vpop.permute.xlu0 %2459 }
 0x2fa   : > { %4510 = vmatpush3.msra.mxu1 %v2460_v61  ;;  %v2463_v13 = vsel %vm2461_vm5, %v2458_v62, %v2460_v61 }
 0x2fb   : > { %4512 = vmatmul.mubr.msk.f32.vlgmr.msra.gmra.mrb[24].mxu1 %vm359_vm0, %v4302_v55  ;;  %4514 = vmatprep.subr.mxu1 %v4653_v5  ;;  %v2456_v14 = vpop.permute.xlu1 %2455 }
 0x2fc   : > { %4294 = vmatmul.mubr.msk.f32.vlgmr.msra.gmra.mrb[8].mxu0 %vm359_vm0, %v4293_v63  ;;  %4516 = vmatprep.mubr.msk.f32.mxu1 %vm4654_vm2, %v4653_v5  ;;  %v2462_v15 = vsel %vm2461_vm5, %v2456_v14, %v2458_v62 }
 0x2fd   : > { %2149 = vmatpush1.msra.mxu0 %v2140_v26  ;;  %2212 = vmatprep.mubr.f32.mxu0 %v4653_v5 }
 0x2fe   : > { %2309 = vmatprep.subr.mxu0 %v2302_v56 }
 0x304   : > { %4297 = vmatmul.mubr.msk.f32.vlgmr.msra.gmra.mrb[8].mxu0 %vm359_vm0, %v4296_v4 }
 0x305   : > { %2310 = vmatpush1.msra.mxu0 %v2301_v12  ;;  %2373 = vmatprep.mubr.f32.mxu0 %v4653_v5 }
 0x306   : > { %2470 = vmatprep.subr.mxu0 %v2463_v13 }
 0x30a   : > { %v2618_v50 = vpop.permute.xlu0 %2617 }
 0x30c   : > { %4300 = vmatmul.mubr.msk.f32.vlgmr.msra.gmra.mrb[8].mxu0 %vm359_vm0, %v4299_v23 }
 0x30d   : > { %2471 = vmatpush1.msra.mxu0 %v2462_v15  ;;  %2534 = vmatprep.mubr.f32.mxu0 %v4653_v5 }
 0x314   : > { %4303 = vmatmul.mubr.msk.f32.vlgmr.msra.gmra.mrb[8].mxu0 %vm359_vm0, %v4302_v55  ;;  %vm2648_vm0 = vcmask 552328  }
 0x315   : > { %2761 = vmatprep.mubr.f32.mxu0 %v4653_v5  ;;  %2649 = vst.msk [vmem:[#allocation3 + $0x8] sm:$0xf] %vm2648_vm0, %v4653_v5  ;;  %vm2686_vm0 = vcmask 31744  }
 0x3a5   : > { %v1339_v16 = vpop.f32.mrb[8].mxu1 }
 0x3a6   : > { %v4473_v17 = vpop.f32.mrb[9].mxu1 }
 0x3a9   : > { %v1483_v18 = vpop.f32.mrb[10].mxu1 }
 0x3aa   : > { %v1484_v19 = vadd.f32 %v1483_v18, %v1339_v16  ;;  %v4478_v20 = vpop.f32.mrb[11].mxu1  ;;  %v4164_v16 = vld [vmem:[%s5225_s7] sm:$0xf] }
 0x3ad   : > { %v1641_v21 = vpop.f32.mrb[12].mxu1 }
 0x3ae   : > { %v1647_v22 = vadd.f32 %v1641_v21, %v1484_v19  ;;  %v4483_v27 = vpop.f32.mrb[13].mxu1  ;;  %v4305_v19 = vld [vmem:[%s5224_s6 + $0x4] sm:$0xf] }
 0x3b1   : > { %v1802_v28 = vpop.f32.mrb[14].mxu1 }
 0x3b2   : > { %v1808_v29 = vadd.f32 %v1802_v28, %v1647_v22  ;;  %v4488_v30 = vpop.f32.mrb[15].mxu1  ;;  %v2670_v28 = vld [vmem:[%s5224_s6] sm:$0xf] }
 0x3b6   : > { %v1963_v31 = vpop.f32.mrb[16].mxu1 }
 0x3b7   : > { %v1969_v32 = vadd.f32 %v1963_v31, %v1808_v29  ;;  %v4493_v33 = vpop.f32.mrb[17].mxu1 }
 0x3bc   : > { %v2124_v34 = vpop.f32.mrb[18].mxu1 }
 0x3bd   : > { %v2130_v35 = vadd.f32 %v2124_v34, %v1969_v32  ;;  %v4498_v36 = vpop.f32.mrb[19].mxu1  ;;  %v4316_v32 = vld [vmem:[%s5224_s6 + $0x8] sm:$0xf] }
 0x3c2   : > { %v2285_v37 = vpop.f32.mrb[20].mxu1 }
 0x3c3   : > { %v2291_v38 = vadd.f32 %v2285_v37, %v2130_v35  ;;  %v4503_v39 = vpop.f32.mrb[21].mxu1  ;;  %v4322_v35 = vld [vmem:[%s5224_s6 + $0xc] sm:$0xf] }
 0x3c9   : > { %v2446_v40 = vpop.f32.mrb[22].mxu1 }
 0x3ca   : > { %v2452_v41 = vadd.f32 %v2446_v40, %v2291_v38  ;;  %v4508_v42 = vpop.f32.mrb[23].mxu1  ;;  %v4328_v40 = vld [vmem:[%s5224_s6 + $0x10] sm:$0xf] }
 0x3ce   : > { %v2607_v43 = vpop.f32.mrb[24].mxu1 }
 0x3cf   : > { %v2613_v44 = vadd.f32 %v2607_v43, %v2452_v41  ;;  %v4513_v45 = vpop.f32.mrb[25].mxu1 }
 0x3d1   : > { %v2622_v63 = vadd.f32 %v2618_v50, %v2613_v44  ;;  %v4334_v44 = vld [vmem:[%s5224_s6 + $0x14] sm:$0xf] }
 0x3d3   : > { %v2625_v4 = vmax.f32 %v2622_v63, 0.0 }
 0x3d5   : > { %v2645_v8 = vmul.f32 %v2639_v7, %v2625_v4 }
 0x3e7   : > { %v2536_v51 = vpop.f32.mrb[8].mxu0 }
 0x3e8   : > { %v2620_v53 = vadd.f32 %v2618_v50, %v2536_v51  ;;  %v2538_v57 = vpop.f32.mrb[9].mxu0  ;;  %v4340_v51 = vld [vmem:[%s5224_s6 + $0x18] sm:$0xf] }
 0x3e9   : > { %v2621_v58 = vadd.f32 %v2618_v50, %v2538_v57  ;;  %v4346_v57 = vld [vmem:[%s5224_s6 + $0x1c] sm:$0xf] }
 0x3ea   : > { %v2623_v60 = vmax.f32 %v2620_v53, 0.0 }
 0x3eb   : > { %v2624_v0 = vmax.f32 %v2621_v58, 0.0 }
 0x3ec   : > { %v2643_v2 = vmul.f32 %v2631_v54, %v2623_v60 }
 0x3ed   : > { %v2644_v3 = vmul.f32 %v2635_v59, %v2624_v0 }
 0x3ef   : > { %v2653_v6 = vcombine.low %v2643_v2, %v2644_v3 }
 0x3f1   : > { %2654 = vrot.lane.b32.xlu1 %v2653_v6, %s4665_s19 }
 0x3f5   : > { %2656 = vrot.lane.b32.xlu1 %v2645_v8, %s4665_s19 }
 0x463   : > { %v2655_v9 = vpop.permute.xlu1 %2654 }
 0x464   : > { %v2658_v10 = vrot.slane %v2655_v9, 4 }
 0x466   : > { %v2660_v23 = vsel %vm2659_vm9, %v2658_v10, %v2655_v9 }
 0x467   : > { %2667 = vst.msk [vmem:[#allocation3] sm:$0xff] %vm2666_vm10, %v2660_v23  ;;  %v2657_v24 = vpop.permute.xlu1 %2656 }
 0x468   : > { %v2661_v11 = vsel %vm2659_vm9, %v2658_v10, %v2657_v24 }
 0x469   : > { %2669 = vst.msk [vmem:[#allocation3 + $0x8] sm:$0xf] %vm2668_vm11, %v2661_v11 }
 0x46e   : > { %v2671_v25 = vld [vmem:[#allocation3] sm:$0xff] }
 0x46f   : > { %v2677_v55 = vcombine.high %v2671_v25, %v2671_v25 }
 0x470   : > { %v2672_v61 = vld [vmem:[#allocation3 + $0x8] sm:$0xf] }
 0x471   : > { %2680 = vrot.lane.b32.xlu0 %v2677_v55, %s4656_s28  ;;  %2682 = vrot.lane.b32.xlu1 %v2672_v61, %s4656_s28  ;;  %v2991_v26 = vld [vmem:[#allocation3 + $0x8] sm:$0xf] }
 0x472   : > { %v3159_v56 = vld [vmem:[#allocation3 + $0x8] sm:$0xf] }
 0x473   : > { %v3327_v62 = vld [vmem:[#allocation3 + $0x8] sm:$0xf] }
 0x474   : > { %v3495_v12 = vld [vmem:[#allocation3 + $0x8] sm:$0xf] }
 0x475   : > { %2678 = vrot.lane.b32.xlu0 %v2671_v25, %s4656_s28  ;;  %2997 = vrot.lane.b32.xlu1 %v2677_v55, %s4671_s25  ;;  %v3663_v13 = vld [vmem:[#allocation3 + $0x8] sm:$0xf] }
 0x476   : > { %v3831_v14 = vld [vmem:[#allocation3 + $0x8] sm:$0xf] }
 0x477   : > { %v3999_v15 = vld [vmem:[#allocation3 + $0x8] sm:$0xf] }
 0x479   : > { %2999 = vrot.lane.b32.xlu0 %v2991_v26, %s4671_s25  ;;  %2995 = vrot.lane.b32.xlu1 %v2671_v25, %s4671_s25 }
 0x47d   : > { %3165 = vrot.lane.b32.xlu0 %v2677_v55, %s4672_s26  ;;  %3167 = vrot.lane.b32.xlu1 %v3159_v56, %s4672_s26 }
 0x481   : > { %3163 = vrot.lane.b32.xlu0 %v2671_v25, %s4672_s26  ;;  %3333 = vrot.lane.b32.xlu1 %v2677_v55, %s4670_s24 }
 0x485   : > { %3335 = vrot.lane.b32.xlu0 %v3327_v62, %s4670_s24  ;;  %3331 = vrot.lane.b32.xlu1 %v2671_v25, %s4670_s24 }
 0x489   : > { %3501 = vrot.lane.b32.xlu0 %v2677_v55, %s4673_s27  ;;  %3503 = vrot.lane.b32.xlu1 %v3495_v12, %s4673_s27 }
 0x48d   : > { %3499 = vrot.lane.b32.xlu0 %v2671_v25, %s4673_s27  ;;  %3669 = vrot.lane.b32.xlu1 %v2677_v55, %s4674_s29 }
 0x491   : > { %3671 = vrot.lane.b32.xlu0 %v3663_v13, %s4674_s29  ;;  %3667 = vrot.lane.b32.xlu1 %v2671_v25, %s4674_s29 }
 0x495   : > { %3837 = vrot.lane.b32.xlu0 %v2677_v55, %s4667_s21  ;;  %3839 = vrot.lane.b32.xlu1 %v3831_v14, %s4667_s21 }
 0x499   : > { %3835 = vrot.lane.b32.xlu0 %v2671_v25, %s4667_s21  ;;  %4005 = vrot.lane.b32.xlu1 %v2677_v55, %s4675_s11  ;;  %s352_s21 = scalar_lea.vmem %s5227_s9, %s4607_s16 }
 0x49d   : > { %4007 = vrot.lane.b32.xlu0 %v3999_v15, %s4675_s11  ;;  %4003 = vrot.lane.b32.xlu1 %v2671_v25, %s4675_s11 }
 0x4a1   : > { %4167 = vperm.xlu0 %4641, %v4164_v16  }
 0x4e3   : > { %v2681_v17 = vpop.permute.xlu0 %2680  ;;  %v2683_v18 = vpop.permute.xlu1 %2682 }
 0x4e4   : > { %v2685_v20 = vsel %vm1193_vm12, %v2681_v17, %v2683_v18  ;;  %4515 = vmatpush3.msk.msra.mxu1 %vm2690_vm6, %v2683_v18 }
 0x4e5   : > { %4306 = vmatprep.subr.msk.mxu0 %vm2690_vm6, %v2685_v20  ;;  %4519 = vmatprep.subr.mxu1 %v4653_v5 }
 0x4e6   : > { %4517 = vmatmul.mubr.msk.f32.vlgmr.msra.gmra.mrb[26].mxu1 %vm2686_vm0, %v4305_v19 }
 0x4e7   : > { %4520 = vmatpush3.msk.msra.mxu1 %vm2690_vm6, %v2672_v61  ;;  %v2679_v21 = vpop.permute.xlu0 %2678  ;;  %v2998_v22 = vpop.permute.xlu1 %2997  ;;  %4521 = vmatprep.mubr.msk.f32.mxu1 %vm4654_vm2, %v4653_v5 }
 0x4e8   : > { %v2684_v27 = vsel %vm1193_vm12, %v2679_v21, %v2681_v17  ;;  %4524 = vmatprep.subr.mxu1 %v4653_v5 }
 0x4e9   : > { %4307 = vmatpush1.msk.msra.mxu0 %vm2690_vm6, %v2684_v27 }
 0x4ea   : > { %4308 = vmatmul.mubr.msk.f32.vlgmr.msra.gmra.mrb[10].mxu0 %vm2686_vm0, %v4305_v19  ;;  %4311 = vmatprep.subr.msk.mxu0 %vm2690_vm6, %v2677_v55 }
 0x4eb   : > { %v3000_v29 = vpop.permute.xlu0 %2999  ;;  %4312 = vmatpush1.msk.msra.mxu0 %vm2690_vm6, %v2671_v25  ;;  %v2996_v30 = vpop.permute.xlu1 %2995  ;;  %4522 = vmatmul.mubr.msk.f32.vlgmr.msra.gmra.mrb[28].mxu1 %vm2686_vm0, %v2670_v28 }
 0x4ec   : > { %v3002_v31 = vsel %vm1495_vm13, %v2998_v22, %v3000_v29  ;;  %4525 = vmatpush3.msk.msra.mxu1 %vm2690_vm6, %v3000_v29  ;;  %4526 = vmatprep.mubr.msk.f32.mxu1 %vm4654_vm2, %v4653_v5  ;;  %v3001_v36 = vsel %vm1495_vm13, %v2996_v30, %v2998_v22 }
 0x4ed   : > { %4317 = vmatprep.subr.msk.mxu0 %vm2690_vm6, %v3002_v31  ;;  %4529 = vmatprep.subr.mxu1 %v4653_v5 }
 0x4ee   : > { %2911 = vmatprep.mubr.f32.mxu0 %v4653_v5 }
 0x4ef   : > { %v3166_v33 = vpop.permute.xlu0 %3165  ;;  %v3168_v34 = vpop.permute.xlu1 %3167  ;;  %4527 = vmatmul.mubr.msk.f32.vlgmr.msra.gmra.mrb[30].mxu1 %vm2686_vm0, %v4316_v32 }
 0x4f0   : > { %4530 = vmatpush3.msk.msra.mxu1 %vm2690_vm6, %v3168_v34  ;;  %4531 = vmatprep.mubr.msk.f32.mxu1 %vm4654_vm2, %v4653_v5  ;;  %v3170_v37 = vsel %vm1656_vm14, %v3166_v33, %v3168_v34 }
 0x4f1   : > { %4534 = vmatprep.subr.mxu1 %v4653_v5 }
 0x4f2   : > { %4313 = vmatmul.mubr.msk.f32.vlgmr.msra.gmra.mrb[10].mxu0 %vm2686_vm0, %v2670_v28 }
 0x4f3   : > { %4318 = vmatpush1.msk.msra.mxu0 %vm2690_vm6, %v3001_v36  ;;  %v3164_v38 = vpop.permute.xlu0 %3163  ;;  %v3334_v39 = vpop.permute.xlu1 %3333  ;;  %4532 = vmatmul.mubr.msk.f32.vlgmr.msra.gmra.mrb[32].mxu1 %vm2686_vm0, %v4322_v35 }
 0x4f4   : > { %4323 = vmatprep.subr.msk.mxu0 %vm2690_vm6, %v3170_v37  ;;  %3076 = vmatprep.mubr.f32.mxu0 %v4653_v5  ;;  %v3169_v43 = vsel %vm1656_vm14, %v3164_v38, %v3166_v33 }
 0x4f5   : > { %4536 = vmatprep.mubr.msk.f32.mxu1 %vm4654_vm2, %v4653_v5 }
 0x4f7   : > { %v3336_v41 = vpop.permute.xlu0 %3335  ;;  %v3332_v42 = vpop.permute.xlu1 %3331 }
 0x4f8   : > { %4535 = vmatpush3.msk.msra.mxu1 %vm2690_vm6, %v3336_v41  ;;  %v3338_v45 = vsel %vm1817_vm15, %v3334_v39, %v3336_v41  ;;  %v3337_v50 = vsel %vm1817_vm15, %v3332_v42, %v3334_v39 }
 0x4f9   : > { %4539 = vmatprep.subr.mxu1 %v4653_v5  ;;  %4537 = vmatmul.mubr.msk.f32.vlgmr.msra.gmra.mrb[34].mxu1 %vm2686_vm0, %v4328_v40 }
 0x4fa   : > { %4319 = vmatmul.mubr.msk.f32.vlgmr.msra.gmra.mrb[10].mxu0 %vm2686_vm0, %v4316_v32  ;;  %4541 = vmatprep.mubr.msk.f32.mxu1 %vm4654_vm2, %v4653_v5 }
 0x4fb   : > { %4324 = vmatpush1.msk.msra.mxu0 %vm2690_vm6, %v3169_v43  ;;  %v3502_v46 = vpop.permute.xlu0 %3501  ;;  %v3504_v47 = vpop.permute.xlu1 %3503  ;;  %3244 = vmatprep.mubr.f32.mxu0 %v4653_v5 }
 0x4fc   : > { %4329 = vmatprep.subr.msk.mxu0 %vm2690_vm6, %v3338_v45  ;;  %4540 = vmatpush3.msk.msra.mxu1 %vm2690_vm6, %v3504_v47  ;;  %v3506_v52 = vsel %vm1978_vm1, %v3502_v46, %v3504_v47 }
 0x4fd   : > { %4544 = vmatprep.subr.mxu1 %v4653_v5  ;;  %4542 = vmatmul.mubr.msk.f32.vlgmr.msra.gmra.mrb[36].mxu1 %vm2686_vm0, %v4334_v44 }
 0x4fe   : > { %4546 = vmatprep.mubr.msk.f32.mxu1 %vm4654_vm2, %v4653_v5 }
 0x4ff   : > { %v3500_v48 = vpop.permute.xlu0 %3499  ;;  %v3670_v49 = vpop.permute.xlu1 %3669 }
 0x500   : > { %v3505_v60 = vsel %vm1978_vm1, %v3500_v48, %v3502_v46 }
 0x502   : > { %4325 = vmatmul.mubr.msk.f32.vlgmr.msra.gmra.mrb[10].mxu0 %vm2686_vm0, %v4322_v35 }
 0x503   : > { %4330 = vmatpush1.msk.msra.mxu0 %vm2690_vm6, %v3337_v50  ;;  %v3672_v53 = vpop.permute.xlu0 %3671  ;;  %v3668_v54 = vpop.permute.xlu1 %3667  ;;  %3412 = vmatprep.mubr.f32.mxu0 %v4653_v5 }
 0x504   : > { %4335 = vmatprep.subr.msk.mxu0 %vm2690_vm6, %v3506_v52  ;;  %4545 = vmatpush3.msk.msra.mxu1 %vm2690_vm6, %v3672_v53  ;;  %v3674_v63 = vsel %vm2139_vm3, %v3670_v49, %v3672_v53  ;;  %v3673_v3 = vsel %vm2139_vm3, %v3668_v54, %v3670_v49 }
 0x505   : > { %4549 = vmatprep.subr.mxu1 %v4653_v5  ;;  %4547 = vmatmul.mubr.msk.f32.vlgmr.msra.gmra.mrb[38].mxu1 %vm2686_vm0, %v4340_v51 }
 0x506   : > { %4551 = vmatprep.mubr.msk.f32.mxu1 %vm4654_vm2, %v4653_v5 }
 0x507   : > { %v3838_v58 = vpop.permute.xlu0 %3837  ;;  %v3840_v59 = vpop.permute.xlu1 %3839 }
 0x508   : > { %4550 = vmatpush3.msk.msra.mxu1 %vm2690_vm6, %v3840_v59  ;;  %v3842_v4 = vsel %vm2300_vm4, %v3838_v58, %v3840_v59 }
 0x509   : > { %4552 = vmatmul.mubr.msk.f32.vlgmr.msra.gmra.mrb[40].mxu1 %vm2686_vm0, %v4346_v57  ;;  %4554 = vmatprep.subr.mxu1 %v4653_v5 }
 0x50a   : > { %4331 = vmatmul.mubr.msk.f32.vlgmr.msra.gmra.mrb[10].mxu0 %vm2686_vm0, %v4328_v40  ;;  %4556 = vmatprep.mubr.msk.f32.mxu1 %vm4654_vm2, %v4653_v5  ;;  %vm4181_vm2 = vcmask 240640  }
 0x50b   : > { %4336 = vmatpush1.msk.msra.mxu0 %vm2690_vm6, %v3505_v60  ;;  %v3836_v0 = vpop.permute.xlu0 %3835  ;;  %3580 = vmatprep.mubr.f32.mxu0 %v4653_v5  ;;  %v4006_v6 = vpop.permute.xlu1 %4005 }
 0x50c   : > { %4341 = vmatprep.subr.msk.mxu0 %vm2690_vm6, %v3674_v63  ;;  %v3841_v7 = vsel %vm2300_vm4, %v3836_v0, %v3838_v58 }
 0x50f   : > { %v4008_v2 = vpop.permute.xlu0 %4007  ;;  %v4004_v9 = vpop.permute.xlu1 %4003 }
 0x510   : > { %4555 = vmatpush3.msk.msra.mxu1 %vm2690_vm6, %v4008_v2  ;;  %v4010_v8 = vsel %vm2461_vm5, %v4006_v6, %v4008_v2  ;;  %v4009_v10 = vsel %vm2461_vm5, %v4004_v9, %v4006_v6 }
 0x511   : > { %4557 = vmatmul.mubr.msk.f32.vlgmr.msra.gmra.mrb[42].mxu1 %vm2686_vm0, %v4352_v1 }
 0x512   : > { %4337 = vmatmul.mubr.msk.f32.vlgmr.msra.gmra.mrb[10].mxu0 %vm2686_vm0, %v4334_v44 }
 0x513   : > { %4342 = vmatpush1.msk.msra.mxu0 %vm2690_vm6, %v3673_v3  ;;  %3748 = vmatprep.mubr.f32.mxu0 %v4653_v5 }
 0x514   : > { %4347 = vmatprep.subr.msk.mxu0 %vm2690_vm6, %v3842_v4 }
 0x51a   : > { %4343 = vmatmul.mubr.msk.f32.vlgmr.msra.gmra.mrb[10].mxu0 %vm2686_vm0, %v4340_v51 }
 0x51b   : > { %4348 = vmatpush1.msk.msra.mxu0 %vm2690_vm6, %v3841_v7  ;;  %3916 = vmatprep.mubr.f32.mxu0 %v4653_v5 }
 0x51c   : > { %4353 = vmatprep.subr.msk.mxu0 %vm2690_vm6, %v4010_v8 }
 0x520   : > { %v4168_v32 = vpop.permute.xlu0 %4167 }
 0x522   : > { %4349 = vmatmul.mubr.msk.f32.vlgmr.msra.gmra.mrb[10].mxu0 %vm2686_vm0, %v4346_v57 }
 0x523   : > { %4354 = vmatpush1.msk.msra.mxu0 %vm2690_vm6, %v4009_v10  ;;  %4084 = vmatprep.mubr.f32.mxu0 %v4653_v5 }
 0x52a   : > { %4355 = vmatmul.mubr.msk.f32.vlgmr.msra.gmra.mrb[10].mxu0 %vm2686_vm0, %v4352_v1 }
 0x5b9   : > { %v2834_v23 = vpop.f32.mrb[26].mxu1 }
 0x5ba   : > { %v4518_v24 = vpop.f32.mrb[27].mxu1 }
 0x5be   : > { %v2984_v11 = vpop.f32.mrb[28].mxu1 }
 0x5bf   : > { %v2985_v25 = vadd.f32 %v2984_v11, %v2834_v23  ;;  %v4523_v55 = vpop.f32.mrb[29].mxu1 }
 0x5c2   : > { %v3149_v61 = vpop.f32.mrb[30].mxu1 }
 0x5c3   : > { %v3155_v26 = vadd.f32 %v3149_v61, %v2985_v25  ;;  %v4528_v56 = vpop.f32.mrb[31].mxu1 }
 0x5c6   : > { %v3317_v62 = vpop.f32.mrb[32].mxu1 }
 0x5c7   : > { %v3323_v12 = vadd.f32 %v3317_v62, %v3155_v26  ;;  %v4533_v13 = vpop.f32.mrb[33].mxu1 }
 0x5cc   : > { %v3485_v14 = vpop.f32.mrb[34].mxu1 }
 0x5cd   : > { %v3491_v15 = vadd.f32 %v3485_v14, %v3323_v12  ;;  %v4538_v16 = vpop.f32.mrb[35].mxu1 }
 0x5d0   : > { %v3653_v17 = vpop.f32.mrb[36].mxu1 }
 0x5d1   : > { %v3659_v18 = vadd.f32 %v3653_v17, %v3491_v15  ;;  %v4543_v5 = vpop.f32.mrb[37].mxu1 }
 0x5d8   : > { %v3821_v19 = vpop.f32.mrb[38].mxu1 }
 0x5d9   : > { %v3827_v20 = vadd.f32 %v3821_v19, %v3659_v18  ;;  %v4548_v21 = vpop.f32.mrb[39].mxu1 }
 0x5dc   : > { %v3989_v22 = vpop.f32.mrb[40].mxu1 }
 0x5dd   : > { %v3995_v27 = vadd.f32 %v3989_v22, %v3827_v20  ;;  %v4553_v28 = vpop.f32.mrb[41].mxu1 }
 0x5e4   : > { %v4157_v29 = vpop.f32.mrb[42].mxu1 }
 0x5e5   : > { %v4163_v30 = vadd.f32 %v4157_v29, %v3995_v27  ;;  %v4558_v31 = vpop.f32.mrb[43].mxu1 }
 0x5e7   : > { %v4172_v33 = vadd.f32 %v4168_v32, %v4163_v30 }
 0x5e9   : > { %v4175_v34 = vmax.f32 %v4172_v33, 0.0 }
 0x5eb   : > { %4182 = vst.msk [vmem:[%s352_s21 + $0x8] sm:$0xf] %vm4181_vm2, %v4175_v34 }
 0x5fd   : > { %v4086_v35 = vpop.f32.mrb[10].mxu0 }
 0x5fe   : > { %v4170_v36 = vadd.f32 %v4168_v32, %v4086_v35  ;;  %v4088_v37 = vpop.f32.mrb[11].mxu0 }
 0x5ff   : > { %v4171_v38 = vadd.f32 %v4168_v32, %v4088_v37 }
 0x600   : > { %v4173_v39 = vmax.f32 %v4170_v36, 0.0 }
 0x601   : > { %v4174_v40 = vmax.f32 %v4171_v38, 0.0 }
 0x603   : > { %v4178_v41 = vcombine.low %v4173_v39, %v4174_v40 }
 0x605   : > { %4180 = vst [vmem:[%s352_s21] sm:$0xff] %v4178_v41 }
 0x606 PF: > { %s19_s30 = sadd.s32 1, %s4650_s30  }
 0x607   : > { %p16_p4 = scmp.ge.s32.totalorder %s19_s30, 4  }
 0x609   :  { %18 = sbr.rel (!%p16_p4) target bundleno = 1 (0x1), region = 105 }

</bundles_post_ra>
